<compile_context>
chip_gen: v6e
topology: v6e:2x2x1
jax: 0.10.0
libtpu: 0.0.40
codegen_flags: <defaults>
</compile_context>

<pallas_src>
import functools

import jax
import jax.numpy as jnp
from jax.experimental import pallas as pl
from jax.experimental.pallas import tpu as pltpu


def _round_up(x, m):
    return (x + m - 1) // m * m


# ----------------------------------------------------------------------------
# Fused kernel: all layers + time loop + linear head in one invocation.
# ----------------------------------------------------------------------------
def _har_lstm_kernel(*refs, seq, batch, hidden, n_layers, in_pads):
    H = hidden
    x_ref = refs[0]                                   # (seq*batch, in_pads[0])
    packed_refs = refs[1:1 + n_layers]                # (rows_l, 4H) each
    whead_ref = refs[1 + n_layers]                    # (seq, H)
    bhead_ref = refs[2 + n_layers]                    # (1,) in SMEM
    out_ref = refs[3 + n_layers]                      # (batch, 1)
    h_all_sc = refs[4 + n_layers] if n_layers > 1 else None  # (seq*batch, H)

    # Gate layout along lanes: [ i | f | g | o ], each H wide.
    # Single-tanh activation: y = tanh(gates * pre); act = y * pre + post_add
    #   g lanes:   pre=1.0, post_add=0.0  -> tanh(gates)
    #   i/f/o:     pre=0.5, post_add=0.5  -> sigmoid(gates)
    lane = jax.lax.broadcasted_iota(jnp.int32, (batch, 4 * H), 1)
    tanh_mask = jnp.logical_and(lane >= 2 * H, lane < 3 * H)
    pre = jnp.where(tanh_mask, 1.0, 0.5).astype(jnp.float32)
    post_add = jnp.where(tanh_mask, 0.0, 0.5).astype(jnp.float32)

    w_head = whead_ref[...]                           # (seq, H), < 1 vreg

    for l in range(n_layers):
        in_pad = in_pads[l]
        pk = packed_refs[l]
        # Static, one-time slices of the packed weight block (sublane aligned
        # except the single bias row, which is a one-time masked load).
        wih = pk[0:in_pad, :]                         # (in_pad, 4H)
        whh = pk[in_pad:in_pad + H, :]                # (H, 4H), stays in vregs
        bias = pk[in_pad + H:in_pad + H + 1, :]       # (1, 4H)

        is_last = (l == n_layers - 1)

        # Hoisted input projection for ALL timesteps: one MXU matmul, kept as
        # an SSA value (no scratch round-trip). Row t*batch + b = timestep t
        # of batch element b.
        layer_in = x_ref[...] if l == 0 else h_all_sc[...]
        ih_all = jnp.dot(layer_in, wih,
                         preferred_element_type=jnp.float32) + bias

        h = jnp.zeros((batch, H), jnp.float32)
        c = jnp.zeros((batch, H), jnp.float32)
        acc_vec = jnp.zeros((batch, H), jnp.float32)

        # Statically unrolled time recurrence: only dot(h, W_hh^T) + gate math
        # is on the serial chain; ih_t slices and the h store are off-chain.
        for t in range(seq):
            ih_t = ih_all[t * batch:(t + 1) * batch, :]
            gates = ih_t + jnp.dot(h, whh, preferred_element_type=jnp.float32)
            y = jnp.tanh(gates * pre)                 # single EUP pass
            act = y * pre + post_add
            i_g = act[:, 0 * H:1 * H]
            f_g = act[:, 1 * H:2 * H]
            g_g = act[:, 2 * H:3 * H]
            o_g = act[:, 3 * H:4 * H]
            c = f_g * c + i_g * g_g
            h = o_g * jnp.tanh(c)
            if is_last:
                # Fused head: accumulate elementwise, reduce lanes once at end.
                acc_vec = acc_vec + h * w_head[t:t + 1, :]
            else:
                # Stash h_t as next layer's input (only VMEM store per step).
                h_all_sc[t * batch:(t + 1) * batch, :] = h
        # TODO(synk): keep W_hh resident in MXU weight regs across the
        # unrolled loop via pltpu.matmul_push_rhs/acc_lhs/pop if the Mosaic
        # dump shows the RHS push is not hoisted.

        if is_last:
            head = jnp.sum(acc_vec, axis=-1, keepdims=True)
            out_ref[...] = head + bhead_ref[0]


# ----------------------------------------------------------------------------
# One-time parameter packing (pre-transposed, sublane-aligned, fused biases).
# ----------------------------------------------------------------------------
def pack_params(params, *, n_features, seq_length, n_hidden, n_layers):
    H = n_hidden
    layers = []
    for l in range(n_layers):
        w_ih, w_hh, b_ih, b_hh = params["lstm"][l]
        in_dim = n_features if l == 0 else H
        in_pad = _round_up(in_dim, 8) if l == 0 else H
        rows = _round_up(in_pad + H + 1, 8)
        pk = jnp.zeros((rows, 4 * H), jnp.float32)
        pk = pk.at[:in_dim, :].set(jnp.transpose(w_ih).astype(jnp.float32))
        pk = pk.at[in_pad:in_pad + H, :].set(
            jnp.transpose(w_hh).astype(jnp.float32))
        pk = pk.at[in_pad + H, :].set((b_ih + b_hh).astype(jnp.float32))
        layers.append(pk)
    return {
        "layers": tuple(layers),
        # Row t holds the head weights for timestep t (torch: W[0, t*H + j]).
        "w_head": params["linear_w"].reshape(seq_length, H).astype(jnp.float32),
        "b_head": params["linear_b"].reshape(1).astype(jnp.float32),
    }


# ----------------------------------------------------------------------------
# Wrapper: single pallas_call.
# ----------------------------------------------------------------------------
def har_lstm_forward(x, packed, *, n_hidden, n_layers):
    """x: (batch, seq, n_features), batch_first like the PyTorch module."""
    batch, seq, n_feat = x.shape
    H = n_hidden
    in_pad0 = _round_up(n_feat, 8)
    in_pads = tuple([in_pad0] + [H] * (n_layers - 1))

    # Time-major flattened rows: row t*batch + b  <->  x[b, t, :]; zero-pad
    # feature columns to the packed (sublane-aligned) W_ih^T row count.
    x_sm = jnp.transpose(x, (1, 0, 2)).reshape(seq * batch, n_feat)
    x_sm = x_sm.astype(jnp.float32)
    if in_pad0 > n_feat:
        x_sm = jnp.concatenate(
            [x_sm, jnp.zeros((seq * batch, in_pad0 - n_feat), jnp.float32)],
            axis=1)

    inputs = [x_sm, *packed["layers"], packed["w_head"], packed["b_head"]]
    in_specs = [pl.BlockSpec((seq * batch, in_pad0), lambda i: (0, 0))]
    for l in range(n_layers):
        r, c = packed["layers"][l].shape
        in_specs.append(pl.BlockSpec((r, c), lambda i: (0, 0)))
    in_specs.append(pl.BlockSpec((seq, H), lambda i: (0, 0)))
    in_specs.append(pl.BlockSpec(memory_space=pltpu.MemorySpace.SMEM))

    scratch_shapes = []
    if n_layers > 1:
        scratch_shapes.append(pltpu.VMEM((seq * batch, H), jnp.float32))

    kernel = functools.partial(_har_lstm_kernel, seq=seq, batch=batch,
                               hidden=H, n_layers=n_layers, in_pads=in_pads)

    return pl.pallas_call(
        kernel,
        out_shape=jax.ShapeDtypeStruct((batch, 1), jnp.float32),
        grid_spec=pltpu.PrefetchScalarGridSpec(
            num_scalar_prefetch=0,
            grid=(1,),
            in_specs=in_specs,
            out_specs=pl.BlockSpec((batch, 1), lambda i: (0, 0)),
            scratch_shapes=scratch_shapes,
        ),
        compiler_params=pltpu.CompilerParams(
            dimension_semantics=("arbitrary",)),
    )(*inputs)


# ----------------------------------------------------------------------------
# Pure-JAX reference (for correctness check) and parameter init.
# ----------------------------------------------------------------------------
def har_lstm_reference(x, params, *, n_hidden, n_layers):
    batch, seq, _ = x.shape
    h_in = x.astype(jnp.float32)
    for l in range(n_layers):
        w_ih, w_hh, b_ih, b_hh = params["lstm"][l]
        h = jnp.zeros((batch, n_hidden), jnp.float32)
        c = jnp.zeros((batch, n_hidden), jnp.float32)
        outs = []
        for t in range(seq):
            g = h_in[:, t, :] @ w_ih.T + h @ w_hh.T + b_ih + b_hh
            i = jax.nn.sigmoid(g[:, 0 * n_hidden:1 * n_hidden])
            f = jax.nn.sigmoid(g[:, 1 * n_hidden:2 * n_hidden])
            gg = jnp.tanh(g[:, 2 * n_hidden:3 * n_hidden])
            o = jax.nn.sigmoid(g[:, 3 * n_hidden:4 * n_hidden])
            c = f * c + i * gg
            h = o * jnp.tanh(c)
            outs.append(h)
        h_in = jnp.stack(outs, axis=1)                    # (batch, seq, H)
    flat = h_in.reshape(batch, seq * n_hidden)
    return flat @ params["linear_w"].T + params["linear_b"]


def init_params(key, n_features, seq_length, n_hidden, n_layers):
    """PyTorch-style uniform(-k, k) init, k = 1/sqrt(fan_in)."""
    k = 1.0 / jnp.sqrt(jnp.float32(n_hidden))
    params = {"lstm": []}
    for l in range(n_layers):
        in_dim = n_features if l == 0 else n_hidden
        key, k1, k2, k3, k4 = jax.random.split(key, 5)
        w_ih = jax.random.uniform(k1, (4 * n_hidden, in_dim), jnp.float32, -k, k)
        w_hh = jax.random.uniform(k2, (4 * n_hidden, n_hidden), jnp.float32, -k, k)
        b_ih = jax.random.uniform(k3, (4 * n_hidden,), jnp.float32, -k, k)
        b_hh = jax.random.uniform(k4, (4 * n_hidden,), jnp.float32, -k, k)
        params["lstm"].append((w_ih, w_hh, b_ih, b_hh))
    kl = 1.0 / jnp.sqrt(jnp.float32(n_hidden * seq_length))
    key, k5, k6 = jax.random.split(key, 3)
    params["linear_w"] = jax.random.uniform(
        k5, (1, n_hidden * seq_length), jnp.float32, -kl, kl)
    params["linear_b"] = jax.random.uniform(k6, (1,), jnp.float32, -kl, kl)
    return params


if __name__ == "__main__":
    BATCH, SEQ, N_FEATURES, N_HIDDEN, N_LAYERS = 2, 8, 4, 32, 2

    key = jax.random.PRNGKey(0)
    key, kx = jax.random.split(key)
    x = jax.random.normal(kx, (BATCH, SEQ, N_FEATURES), jnp.float32)
    params = init_params(key, N_FEATURES, SEQ, N_HIDDEN, N_LAYERS)

    # One-time weight layout plumbing (not on the per-call path).
    packed = pack_params(params, n_features=N_FEATURES, seq_length=SEQ,
                         n_hidden=N_HIDDEN, n_layers=N_LAYERS)
    packed = jax.tree_util.tree_map(jax.device_put, packed)

    fwd = jax.jit(functools.partial(
        har_lstm_forward, n_hidden=N_HIDDEN, n_layers=N_LAYERS))
    out = fwd(x, packed)
    jax.block_until_ready(out)
    assert out.shape == (BATCH, 1), out.shape

    ref = har_lstm_reference(x, params, n_hidden=N_HIDDEN, n_layers=N_LAYERS)
    assert jnp.allclose(out, ref, rtol=2e-3, atol=2e-3), (out, ref)
    print("KERNEL_OK")
</pallas_src>

<mosaic_0001>
module attributes {stable_mosaic.version = 11 : i64} {
  func.func @_har_lstm_kernel(%arg0: i32, %arg1: memref<16x8xf32, #tpu.memory_space<vmem>>, %arg2: memref<48x128xf32, #tpu.memory_space<vmem>>, %arg3: memref<72x128xf32, #tpu.memory_space<vmem>>, %arg4: memref<8x32xf32, #tpu.memory_space<vmem>>, %arg5: memref<1xf32, #tpu.memory_space<smem>>, %arg6: memref<2x1xf32, #tpu.memory_space<vmem>>, %arg7: memref<16x32xf32, #tpu.memory_space<vmem>>) attributes {dimension_semantics = [#tpu.dimension_semantics<arbitrary>], iteration_bounds = array<i64: 1>, scalar_prefetch = 0 : i64, scratch_operands = 1 : i64, tpu.core_type = #tpu.core_type<tc>, window_params = [{pipeline_mode = #tpu.pipeline_mode<synchronous>, transform_indices = @transform_0, window_bounds = array<i64: 16, 8>}, {pipeline_mode = #tpu.pipeline_mode<synchronous>, transform_indices = @transform_1, window_bounds = array<i64: 48, 128>}, {pipeline_mode = #tpu.pipeline_mode<synchronous>, transform_indices = @transform_2, window_bounds = array<i64: 72, 128>}, {pipeline_mode = #tpu.pipeline_mode<synchronous>, transform_indices = @transform_3, window_bounds = array<i64: 8, 32>}, {transform_indices = @transform_4, window_bounds = array<i64: 1>}, {pipeline_mode = #tpu.pipeline_mode<synchronous>, transform_indices = @transform_5, window_bounds = array<i64: 2, 1>}]} {
    %0 = tpu.iota {dimensions = array<i32: 1>} : vector<2x128xi32>
    %c64_i32 = arith.constant 64 : i32
    %1 = vector.broadcast %c64_i32 : i32 to vector<2x128xi32>
    %2 = arith.cmpi sge, %0, %1 : vector<2x128xi32>
    %c96_i32 = arith.constant 96 : i32
    %3 = vector.broadcast %c96_i32 : i32 to vector<2x128xi32>
    %4 = arith.cmpi slt, %0, %3 : vector<2x128xi32>
    %5 = arith.andi %2, %4 : vector<2x128xi1>
    %cst = arith.constant 1.000000e+00 : f32
    %cst_0 = arith.constant 5.000000e-01 : f32
    %6 = vector.broadcast %cst : f32 to vector<2x128xf32>
    %7 = vector.broadcast %cst_0 : f32 to vector<2x128xf32>
    %8 = arith.select %5, %6, %7 : vector<2x128xi1>, vector<2x128xf32>
    %cst_1 = arith.constant 0.000000e+00 : f32
    %cst_2 = arith.constant 5.000000e-01 : f32
    %9 = vector.broadcast %cst_1 : f32 to vector<2x128xf32>
    %10 = vector.broadcast %cst_2 : f32 to vector<2x128xf32>
    %11 = arith.select %5, %9, %10 : vector<2x128xi1>, vector<2x128xf32>
    %c0 = arith.constant 0 : index
    %c0_3 = arith.constant 0 : index
    %12 = vector.load %arg4[%c0, %c0_3] : memref<8x32xf32, #tpu.memory_space<vmem>>, vector<8x32xf32>
    %c0_4 = arith.constant 0 : index
    %c0_5 = arith.constant 0 : index
    %13 = vector.load %arg2[%c0_4, %c0_5] : memref<48x128xf32, #tpu.memory_space<vmem>>, vector<8x128xf32>
    %c8 = arith.constant 8 : index
    %c0_6 = arith.constant 0 : index
    %14 = vector.load %arg2[%c8, %c0_6] : memref<48x128xf32, #tpu.memory_space<vmem>>, vector<32x128xf32>
    %c40 = arith.constant 40 : index
    %c0_7 = arith.constant 0 : index
    %15 = vector.load %arg2[%c40, %c0_7] : memref<48x128xf32, #tpu.memory_space<vmem>>, vector<1x128xf32>
    %c0_8 = arith.constant 0 : index
    %c0_9 = arith.constant 0 : index
    %16 = vector.load %arg1[%c0_8, %c0_9] : memref<16x8xf32, #tpu.memory_space<vmem>>, vector<16x8xf32>
    %cst_10 = arith.constant dense<0.000000e+00> : vector<16x128xf32>
    %17 = tpu.matmul %16, %13, %cst_10 {dimension_numbers = #tpu.dot_dimension_numbers<[1], [0], [0], [1], [0, 0, 1, 1], [], []>} : vector<16x8xf32>, vector<8x128xf32>, vector<16x128xf32> -> vector<16x128xf32>
    %18 = vector.broadcast %15 : vector<1x128xf32> to vector<16x128xf32>
    %19 = arith.addf %17, %18 : vector<16x128xf32>
    %cst_11 = arith.constant 0.000000e+00 : f32
    %20 = vector.broadcast %cst_11 : f32 to vector<2x32xf32>
    %cst_12 = arith.constant 0.000000e+00 : f32
    %21 = vector.broadcast %cst_12 : f32 to vector<2x32xf32>
    %22 = vector.extract_strided_slice %19 {offsets = [0, 0], sizes = [2, 128], strides = [1, 1]} : vector<16x128xf32> to vector<2x128xf32>
    %cst_13 = arith.constant dense<0.000000e+00> : vector<2x128xf32>
    %23 = tpu.matmul %20, %14, %cst_13 {dimension_numbers = #tpu.dot_dimension_numbers<[1], [0], [0], [1], [0, 0, 1, 1], [], []>} : vector<2x32xf32>, vector<32x128xf32>, vector<2x128xf32> -> vector<2x128xf32>
    %24 = arith.addf %22, %23 : vector<2x128xf32>
    %25 = arith.mulf %24, %8 : vector<2x128xf32>
    %26 = math.tanh %25 : vector<2x128xf32>
    %27 = arith.mulf %26, %8 : vector<2x128xf32>
    %28 = arith.addf %27, %11 : vector<2x128xf32>
    %29 = vector.extract_strided_slice %28 {offsets = [0, 0], sizes = [2, 32], strides = [1, 1]} : vector<2x128xf32> to vector<2x32xf32>
    %30 = vector.extract_strided_slice %28 {offsets = [0, 32], sizes = [2, 32], strides = [1, 1]} : vector<2x128xf32> to vector<2x32xf32>
    %31 = vector.extract_strided_slice %28 {offsets = [0, 64], sizes = [2, 32], strides = [1, 1]} : vector<2x128xf32> to vector<2x32xf32>
    %32 = vector.extract_strided_slice %28 {offsets = [0, 96], sizes = [2, 32], strides = [1, 1]} : vector<2x128xf32> to vector<2x32xf32>
    %33 = arith.mulf %30, %21 : vector<2x32xf32>
    %34 = arith.mulf %29, %31 : vector<2x32xf32>
    %35 = arith.addf %33, %34 : vector<2x32xf32>
    %36 = math.tanh %35 : vector<2x32xf32>
    %37 = arith.mulf %32, %36 : vector<2x32xf32>
    %c0_14 = arith.constant 0 : index
    %c0_15 = arith.constant 0 : index
    %38 = vector.load %arg7[%c0_14, %c0_15] : memref<16x32xf32, #tpu.memory_space<vmem>>, vector<2x32xf32>
    tpu.vector_store %arg7[%c0_14, %c0_15], %37 {strides = array<i32>} : memref<16x32xf32, #tpu.memory_space<vmem>>, vector<2x32xf32>,
    %39 = vector.extract_strided_slice %19 {offsets = [2, 0], sizes = [2, 128], strides = [1, 1]} : vector<16x128xf32> to vector<2x128xf32>
    %cst_16 = arith.constant dense<0.000000e+00> : vector<2x128xf32>
    %40 = tpu.matmul %37, %14, %cst_16 {dimension_numbers = #tpu.dot_dimension_numbers<[1], [0], [0], [1], [0, 0, 1, 1], [], []>} : vector<2x32xf32>, vector<32x128xf32>, vector<2x128xf32> -> vector<2x128xf32>
    %41 = arith.addf %39, %40 : vector<2x128xf32>
    %42 = arith.mulf %41, %8 : vector<2x128xf32>
    %43 = math.tanh %42 : vector<2x128xf32>
    %44 = arith.mulf %43, %8 : vector<2x128xf32>
    %45 = arith.addf %44, %11 : vector<2x128xf32>
    %46 = vector.extract_strided_slice %45 {offsets = [0, 0], sizes = [2, 32], strides = [1, 1]} : vector<2x128xf32> to vector<2x32xf32>
    %47 = vector.extract_strided_slice %45 {offsets = [0, 32], sizes = [2, 32], strides = [1, 1]} : vector<2x128xf32> to vector<2x32xf32>
    %48 = vector.extract_strided_slice %45 {offsets = [0, 64], sizes = [2, 32], strides = [1, 1]} : vector<2x128xf32> to vector<2x32xf32>
    %49 = vector.extract_strided_slice %45 {offsets = [0, 96], sizes = [2, 32], strides = [1, 1]} : vector<2x128xf32> to vector<2x32xf32>
    %50 = arith.mulf %47, %35 : vector<2x32xf32>
    %51 = arith.mulf %46, %48 : vector<2x32xf32>
    %52 = arith.addf %50, %51 : vector<2x32xf32>
    %53 = math.tanh %52 : vector<2x32xf32>
    %54 = arith.mulf %49, %53 : vector<2x32xf32>
    %c2 = arith.constant 2 : index
    %c0_17 = arith.constant 0 : index
    %55 = vector.load %arg7[%c2, %c0_17] : memref<16x32xf32, #tpu.memory_space<vmem>>, vector<2x32xf32>
    tpu.vector_store %arg7[%c2, %c0_17], %54 {strides = array<i32>} : memref<16x32xf32, #tpu.memory_space<vmem>>, vector<2x32xf32>,
    %56 = vector.extract_strided_slice %19 {offsets = [4, 0], sizes = [2, 128], strides = [1, 1]} : vector<16x128xf32> to vector<2x128xf32>
    %cst_18 = arith.constant dense<0.000000e+00> : vector<2x128xf32>
    %57 = tpu.matmul %54, %14, %cst_18 {dimension_numbers = #tpu.dot_dimension_numbers<[1], [0], [0], [1], [0, 0, 1, 1], [], []>} : vector<2x32xf32>, vector<32x128xf32>, vector<2x128xf32> -> vector<2x128xf32>
    %58 = arith.addf %56, %57 : vector<2x128xf32>
    %59 = arith.mulf %58, %8 : vector<2x128xf32>
    %60 = math.tanh %59 : vector<2x128xf32>
    %61 = arith.mulf %60, %8 : vector<2x128xf32>
    %62 = arith.addf %61, %11 : vector<2x128xf32>
    %63 = vector.extract_strided_slice %62 {offsets = [0, 0], sizes = [2, 32], strides = [1, 1]} : vector<2x128xf32> to vector<2x32xf32>
    %64 = vector.extract_strided_slice %62 {offsets = [0, 32], sizes = [2, 32], strides = [1, 1]} : vector<2x128xf32> to vector<2x32xf32>
    %65 = vector.extract_strided_slice %62 {offsets = [0, 64], sizes = [2, 32], strides = [1, 1]} : vector<2x128xf32> to vector<2x32xf32>
    %66 = vector.extract_strided_slice %62 {offsets = [0, 96], sizes = [2, 32], strides = [1, 1]} : vector<2x128xf32> to vector<2x32xf32>
    %67 = arith.mulf %64, %52 : vector<2x32xf32>
    %68 = arith.mulf %63, %65 : vector<2x32xf32>
    %69 = arith.addf %67, %68 : vector<2x32xf32>
    %70 = math.tanh %69 : vector<2x32xf32>
    %71 = arith.mulf %66, %70 : vector<2x32xf32>
    %c4 = arith.constant 4 : index
    %c0_19 = arith.constant 0 : index
    %72 = vector.load %arg7[%c4, %c0_19] : memref<16x32xf32, #tpu.memory_space<vmem>>, vector<2x32xf32>
    tpu.vector_store %arg7[%c4, %c0_19], %71 {strides = array<i32>} : memref<16x32xf32, #tpu.memory_space<vmem>>, vector<2x32xf32>,
    %73 = vector.extract_strided_slice %19 {offsets = [6, 0], sizes = [2, 128], strides = [1, 1]} : vector<16x128xf32> to vector<2x128xf32>
    %cst_20 = arith.constant dense<0.000000e+00> : vector<2x128xf32>
    %74 = tpu.matmul %71, %14, %cst_20 {dimension_numbers = #tpu.dot_dimension_numbers<[1], [0], [0], [1], [0, 0, 1, 1], [], []>} : vector<2x32xf32>, vector<32x128xf32>, vector<2x128xf32> -> vector<2x128xf32>
    %75 = arith.addf %73, %74 : vector<2x128xf32>
    %76 = arith.mulf %75, %8 : vector<2x128xf32>
    %77 = math.tanh %76 : vector<2x128xf32>
    %78 = arith.mulf %77, %8 : vector<2x128xf32>
    %79 = arith.addf %78, %11 : vector<2x128xf32>
    %80 = vector.extract_strided_slice %79 {offsets = [0, 0], sizes = [2, 32], strides = [1, 1]} : vector<2x128xf32> to vector<2x32xf32>
    %81 = vector.extract_strided_slice %79 {offsets = [0, 32], sizes = [2, 32], strides = [1, 1]} : vector<2x128xf32> to vector<2x32xf32>
    %82 = vector.extract_strided_slice %79 {offsets = [0, 64], sizes = [2, 32], strides = [1, 1]} : vector<2x128xf32> to vector<2x32xf32>
    %83 = vector.extract_strided_slice %79 {offsets = [0, 96], sizes = [2, 32], strides = [1, 1]} : vector<2x128xf32> to vector<2x32xf32>
    %84 = arith.mulf %81, %69 : vector<2x32xf32>
    %85 = arith.mulf %80, %82 : vector<2x32xf32>
    %86 = arith.addf %84, %85 : vector<2x32xf32>
    %87 = math.tanh %86 : vector<2x32xf32>
    %88 = arith.mulf %83, %87 : vector<2x32xf32>
    %c6 = arith.constant 6 : index
    %c0_21 = arith.constant 0 : index
    %89 = vector.load %arg7[%c6, %c0_21] : memref<16x32xf32, #tpu.memory_space<vmem>>, vector<2x32xf32>
    tpu.vector_store %arg7[%c6, %c0_21], %88 {strides = array<i32>} : memref<16x32xf32, #tpu.memory_space<vmem>>, vector<2x32xf32>,
    %90 = vector.extract_strided_slice %19 {offsets = [8, 0], sizes = [2, 128], strides = [1, 1]} : vector<16x128xf32> to vector<2x128xf32>
    %cst_22 = arith.constant dense<0.000000e+00> : vector<2x128xf32>
    %91 = tpu.matmul %88, %14, %cst_22 {dimension_numbers = #tpu.dot_dimension_numbers<[1], [0], [0], [1], [0, 0, 1, 1], [], []>} : vector<2x32xf32>, vector<32x128xf32>, vector<2x128xf32> -> vector<2x128xf32>
    %92 = arith.addf %90, %91 : vector<2x128xf32>
    %93 = arith.mulf %92, %8 : vector<2x128xf32>
    %94 = math.tanh %93 : vector<2x128xf32>
    %95 = arith.mulf %94, %8 : vector<2x128xf32>
    %96 = arith.addf %95, %11 : vector<2x128xf32>
    %97 = vector.extract_strided_slice %96 {offsets = [0, 0], sizes = [2, 32], strides = [1, 1]} : vector<2x128xf32> to vector<2x32xf32>
    %98 = vector.extract_strided_slice %96 {offsets = [0, 32], sizes = [2, 32], strides = [1, 1]} : vector<2x128xf32> to vector<2x32xf32>
    %99 = vector.extract_strided_slice %96 {offsets = [0, 64], sizes = [2, 32], strides = [1, 1]} : vector<2x128xf32> to vector<2x32xf32>
    %100 = vector.extract_strided_slice %96 {offsets = [0, 96], sizes = [2, 32], strides = [1, 1]} : vector<2x128xf32> to vector<2x32xf32>
    %101 = arith.mulf %98, %86 : vector<2x32xf32>
    %102 = arith.mulf %97, %99 : vector<2x32xf32>
    %103 = arith.addf %101, %102 : vector<2x32xf32>
    %104 = math.tanh %103 : vector<2x32xf32>
    %105 = arith.mulf %100, %104 : vector<2x32xf32>
    %c8_23 = arith.constant 8 : index
    %c0_24 = arith.constant 0 : index
    %106 = vector.load %arg7[%c8_23, %c0_24] : memref<16x32xf32, #tpu.memory_space<vmem>>, vector<2x32xf32>
    tpu.vector_store %arg7[%c8_23, %c0_24], %105 {strides = array<i32>} : memref<16x32xf32, #tpu.memory_space<vmem>>, vector<2x32xf32>,
    %107 = vector.extract_strided_slice %19 {offsets = [10, 0], sizes = [2, 128], strides = [1, 1]} : vector<16x128xf32> to vector<2x128xf32>
    %cst_25 = arith.constant dense<0.000000e+00> : vector<2x128xf32>
    %108 = tpu.matmul %105, %14, %cst_25 {dimension_numbers = #tpu.dot_dimension_numbers<[1], [0], [0], [1], [0, 0, 1, 1], [], []>} : vector<2x32xf32>, vector<32x128xf32>, vector<2x128xf32> -> vector<2x128xf32>
    %109 = arith.addf %107, %108 : vector<2x128xf32>
    %110 = arith.mulf %109, %8 : vector<2x128xf32>
    %111 = math.tanh %110 : vector<2x128xf32>
    %112 = arith.mulf %111, %8 : vector<2x128xf32>
    %113 = arith.addf %112, %11 : vector<2x128xf32>
    %114 = vector.extract_strided_slice %113 {offsets = [0, 0], sizes = [2, 32], strides = [1, 1]} : vector<2x128xf32> to vector<2x32xf32>
    %115 = vector.extract_strided_slice %113 {offsets = [0, 32], sizes = [2, 32], strides = [1, 1]} : vector<2x128xf32> to vector<2x32xf32>
    %116 = vector.extract_strided_slice %113 {offsets = [0, 64], sizes = [2, 32], strides = [1, 1]} : vector<2x128xf32> to vector<2x32xf32>
    %117 = vector.extract_strided_slice %113 {offsets = [0, 96], sizes = [2, 32], strides = [1, 1]} : vector<2x128xf32> to vector<2x32xf32>
    %118 = arith.mulf %115, %103 : vector<2x32xf32>
    %119 = arith.mulf %114, %116 : vector<2x32xf32>
    %120 = arith.addf %118, %119 : vector<2x32xf32>
    %121 = math.tanh %120 : vector<2x32xf32>
    %122 = arith.mulf %117, %121 : vector<2x32xf32>
    %c10 = arith.constant 10 : index
    %c0_26 = arith.constant 0 : index
    %123 = vector.load %arg7[%c10, %c0_26] : memref<16x32xf32, #tpu.memory_space<vmem>>, vector<2x32xf32>
    tpu.vector_store %arg7[%c10, %c0_26], %122 {strides = array<i32>} : memref<16x32xf32, #tpu.memory_space<vmem>>, vector<2x32xf32>,
    %124 = vector.extract_strided_slice %19 {offsets = [12, 0], sizes = [2, 128], strides = [1, 1]} : vector<16x128xf32> to vector<2x128xf32>
    %cst_27 = arith.constant dense<0.000000e+00> : vector<2x128xf32>
    %125 = tpu.matmul %122, %14, %cst_27 {dimension_numbers = #tpu.dot_dimension_numbers<[1], [0], [0], [1], [0, 0, 1, 1], [], []>} : vector<2x32xf32>, vector<32x128xf32>, vector<2x128xf32> -> vector<2x128xf32>
    %126 = arith.addf %124, %125 : vector<2x128xf32>
    %127 = arith.mulf %126, %8 : vector<2x128xf32>
    %128 = math.tanh %127 : vector<2x128xf32>
    %129 = arith.mulf %128, %8 : vector<2x128xf32>
    %130 = arith.addf %129, %11 : vector<2x128xf32>
    %131 = vector.extract_strided_slice %130 {offsets = [0, 0], sizes = [2, 32], strides = [1, 1]} : vector<2x128xf32> to vector<2x32xf32>
    %132 = vector.extract_strided_slice %130 {offsets = [0, 32], sizes = [2, 32], strides = [1, 1]} : vector<2x128xf32> to vector<2x32xf32>
    %133 = vector.extract_strided_slice %130 {offsets = [0, 64], sizes = [2, 32], strides = [1, 1]} : vector<2x128xf32> to vector<2x32xf32>
    %134 = vector.extract_strided_slice %130 {offsets = [0, 96], sizes = [2, 32], strides = [1, 1]} : vector<2x128xf32> to vector<2x32xf32>
    %135 = arith.mulf %132, %120 : vector<2x32xf32>
    %136 = arith.mulf %131, %133 : vector<2x32xf32>
    %137 = arith.addf %135, %136 : vector<2x32xf32>
    %138 = math.tanh %137 : vector<2x32xf32>
    %139 = arith.mulf %134, %138 : vector<2x32xf32>
    %c12 = arith.constant 12 : index
    %c0_28 = arith.constant 0 : index
    %140 = vector.load %arg7[%c12, %c0_28] : memref<16x32xf32, #tpu.memory_space<vmem>>, vector<2x32xf32>
    tpu.vector_store %arg7[%c12, %c0_28], %139 {strides = array<i32>} : memref<16x32xf32, #tpu.memory_space<vmem>>, vector<2x32xf32>,
    %141 = vector.extract_strided_slice %19 {offsets = [14, 0], sizes = [2, 128], strides = [1, 1]} : vector<16x128xf32> to vector<2x128xf32>
    %cst_29 = arith.constant dense<0.000000e+00> : vector<2x128xf32>
    %142 = tpu.matmul %139, %14, %cst_29 {dimension_numbers = #tpu.dot_dimension_numbers<[1], [0], [0], [1], [0, 0, 1, 1], [], []>} : vector<2x32xf32>, vector<32x128xf32>, vector<2x128xf32> -> vector<2x128xf32>
    %143 = arith.addf %141, %142 : vector<2x128xf32>
    %144 = arith.mulf %143, %8 : vector<2x128xf32>
    %145 = math.tanh %144 : vector<2x128xf32>
    %146 = arith.mulf %145, %8 : vector<2x128xf32>
    %147 = arith.addf %146, %11 : vector<2x128xf32>
    %148 = vector.extract_strided_slice %147 {offsets = [0, 0], sizes = [2, 32], strides = [1, 1]} : vector<2x128xf32> to vector<2x32xf32>
    %149 = vector.extract_strided_slice %147 {offsets = [0, 32], sizes = [2, 32], strides = [1, 1]} : vector<2x128xf32> to vector<2x32xf32>
    %150 = vector.extract_strided_slice %147 {offsets = [0, 64], sizes = [2, 32], strides = [1, 1]} : vector<2x128xf32> to vector<2x32xf32>
    %151 = vector.extract_strided_slice %147 {offsets = [0, 96], sizes = [2, 32], strides = [1, 1]} : vector<2x128xf32> to vector<2x32xf32>
    %152 = arith.mulf %149, %137 : vector<2x32xf32>
    %153 = arith.mulf %148, %150 : vector<2x32xf32>
    %154 = arith.addf %152, %153 : vector<2x32xf32>
    %155 = math.tanh %154 : vector<2x32xf32>
    %156 = arith.mulf %151, %155 : vector<2x32xf32>
    %c14 = arith.constant 14 : index
    %c0_30 = arith.constant 0 : index
    %157 = vector.load %arg7[%c14, %c0_30] : memref<16x32xf32, #tpu.memory_space<vmem>>, vector<2x32xf32>
    tpu.vector_store %arg7[%c14, %c0_30], %156 {strides = array<i32>} : memref<16x32xf32, #tpu.memory_space<vmem>>, vector<2x32xf32>,
    %c0_31 = arith.constant 0 : index
    %c0_32 = arith.constant 0 : index
    %158 = vector.load %arg3[%c0_31, %c0_32] : memref<72x128xf32, #tpu.memory_space<vmem>>, vector<32x128xf32>
    %c32 = arith.constant 32 : index
    %c0_33 = arith.constant 0 : index
    %159 = vector.load %arg3[%c32, %c0_33] : memref<72x128xf32, #tpu.memory_space<vmem>>, vector<32x128xf32>
    %c64 = arith.constant 64 : index
    %c0_34 = arith.constant 0 : index
    %160 = vector.load %arg3[%c64, %c0_34] : memref<72x128xf32, #tpu.memory_space<vmem>>, vector<1x128xf32>
    %c0_35 = arith.constant 0 : index
    %c0_36 = arith.constant 0 : index
    %161 = vector.load %arg7[%c0_35, %c0_36] : memref<16x32xf32, #tpu.memory_space<vmem>>, vector<16x32xf32>
    %cst_37 = arith.constant dense<0.000000e+00> : vector<16x128xf32>
    %162 = tpu.matmul %161, %158, %cst_37 {dimension_numbers = #tpu.dot_dimension_numbers<[1], [0], [0], [1], [0, 0, 1, 1], [], []>} : vector<16x32xf32>, vector<32x128xf32>, vector<16x128xf32> -> vector<16x128xf32>
    %163 = vector.broadcast %160 : vector<1x128xf32> to vector<16x128xf32>
    %164 = arith.addf %162, %163 : vector<16x128xf32>
    %cst_38 = arith.constant 0.000000e+00 : f32
    %165 = vector.broadcast %cst_38 : f32 to vector<2x32xf32>
    %cst_39 = arith.constant 0.000000e+00 : f32
    %166 = vector.broadcast %cst_39 : f32 to vector<2x32xf32>
    %cst_40 = arith.constant 0.000000e+00 : f32
    %167 = vector.broadcast %cst_40 : f32 to vector<2x32xf32>
    %168 = vector.extract_strided_slice %164 {offsets = [0, 0], sizes = [2, 128], strides = [1, 1]} : vector<16x128xf32> to vector<2x128xf32>
    %cst_41 = arith.constant dense<0.000000e+00> : vector<2x128xf32>
    %169 = tpu.matmul %165, %159, %cst_41 {dimension_numbers = #tpu.dot_dimension_numbers<[1], [0], [0], [1], [0, 0, 1, 1], [], []>} : vector<2x32xf32>, vector<32x128xf32>, vector<2x128xf32> -> vector<2x128xf32>
    %170 = arith.addf %168, %169 : vector<2x128xf32>
    %171 = arith.mulf %170, %8 : vector<2x128xf32>
    %172 = math.tanh %171 : vector<2x128xf32>
    %173 = arith.mulf %172, %8 : vector<2x128xf32>
    %174 = arith.addf %173, %11 : vector<2x128xf32>
    %175 = vector.extract_strided_slice %174 {offsets = [0, 0], sizes = [2, 32], strides = [1, 1]} : vector<2x128xf32> to vector<2x32xf32>
    %176 = vector.extract_strided_slice %174 {offsets = [0, 32], sizes = [2, 32], strides = [1, 1]} : vector<2x128xf32> to vector<2x32xf32>
    %177 = vector.extract_strided_slice %174 {offsets = [0, 64], sizes = [2, 32], strides = [1, 1]} : vector<2x128xf32> to vector<2x32xf32>
    %178 = vector.extract_strided_slice %174 {offsets = [0, 96], sizes = [2, 32], strides = [1, 1]} : vector<2x128xf32> to vector<2x32xf32>
    %179 = arith.mulf %176, %166 : vector<2x32xf32>
    %180 = arith.mulf %175, %177 : vector<2x32xf32>
    %181 = arith.addf %179, %180 : vector<2x32xf32>
    %182 = math.tanh %181 : vector<2x32xf32>
    %183 = arith.mulf %178, %182 : vector<2x32xf32>
    %184 = vector.extract_strided_slice %12 {offsets = [0, 0], sizes = [1, 32], strides = [1, 1]} : vector<8x32xf32> to vector<1x32xf32>
    %185 = vector.broadcast %184 : vector<1x32xf32> to vector<2x32xf32>
    %186 = arith.mulf %183, %185 : vector<2x32xf32>
    %187 = arith.addf %167, %186 : vector<2x32xf32>
    %188 = vector.extract_strided_slice %164 {offsets = [2, 0], sizes = [2, 128], strides = [1, 1]} : vector<16x128xf32> to vector<2x128xf32>
    %cst_42 = arith.constant dense<0.000000e+00> : vector<2x128xf32>
    %189 = tpu.matmul %183, %159, %cst_42 {dimension_numbers = #tpu.dot_dimension_numbers<[1], [0], [0], [1], [0, 0, 1, 1], [], []>} : vector<2x32xf32>, vector<32x128xf32>, vector<2x128xf32> -> vector<2x128xf32>
    %190 = arith.addf %188, %189 : vector<2x128xf32>
    %191 = arith.mulf %190, %8 : vector<2x128xf32>
    %192 = math.tanh %191 : vector<2x128xf32>
    %193 = arith.mulf %192, %8 : vector<2x128xf32>
    %194 = arith.addf %193, %11 : vector<2x128xf32>
    %195 = vector.extract_strided_slice %194 {offsets = [0, 0], sizes = [2, 32], strides = [1, 1]} : vector<2x128xf32> to vector<2x32xf32>
    %196 = vector.extract_strided_slice %194 {offsets = [0, 32], sizes = [2, 32], strides = [1, 1]} : vector<2x128xf32> to vector<2x32xf32>
    %197 = vector.extract_strided_slice %194 {offsets = [0, 64], sizes = [2, 32], strides = [1, 1]} : vector<2x128xf32> to vector<2x32xf32>
    %198 = vector.extract_strided_slice %194 {offsets = [0, 96], sizes = [2, 32], strides = [1, 1]} : vector<2x128xf32> to vector<2x32xf32>
    %199 = arith.mulf %196, %181 : vector<2x32xf32>
    %200 = arith.mulf %195, %197 : vector<2x32xf32>
    %201 = arith.addf %199, %200 : vector<2x32xf32>
    %202 = math.tanh %201 : vector<2x32xf32>
    %203 = arith.mulf %198, %202 : vector<2x32xf32>
    %204 = vector.extract_strided_slice %12 {offsets = [1, 0], sizes = [1, 32], strides = [1, 1]} : vector<8x32xf32> to vector<1x32xf32>
    %205 = vector.broadcast %204 : vector<1x32xf32> to vector<2x32xf32>
    %206 = arith.mulf %203, %205 : vector<2x32xf32>
    %207 = arith.addf %187, %206 : vector<2x32xf32>
    %208 = vector.extract_strided_slice %164 {offsets = [4, 0], sizes = [2, 128], strides = [1, 1]} : vector<16x128xf32> to vector<2x128xf32>
    %cst_43 = arith.constant dense<0.000000e+00> : vector<2x128xf32>
    %209 = tpu.matmul %203, %159, %cst_43 {dimension_numbers = #tpu.dot_dimension_numbers<[1], [0], [0], [1], [0, 0, 1, 1], [], []>} : vector<2x32xf32>, vector<32x128xf32>, vector<2x128xf32> -> vector<2x128xf32>
    %210 = arith.addf %208, %209 : vector<2x128xf32>
    %211 = arith.mulf %210, %8 : vector<2x128xf32>
    %212 = math.tanh %211 : vector<2x128xf32>
    %213 = arith.mulf %212, %8 : vector<2x128xf32>
    %214 = arith.addf %213, %11 : vector<2x128xf32>
    %215 = vector.extract_strided_slice %214 {offsets = [0, 0], sizes = [2, 32], strides = [1, 1]} : vector<2x128xf32> to vector<2x32xf32>
    %216 = vector.extract_strided_slice %214 {offsets = [0, 32], sizes = [2, 32], strides = [1, 1]} : vector<2x128xf32> to vector<2x32xf32>
    %217 = vector.extract_strided_slice %214 {offsets = [0, 64], sizes = [2, 32], strides = [1, 1]} : vector<2x128xf32> to vector<2x32xf32>
    %218 = vector.extract_strided_slice %214 {offsets = [0, 96], sizes = [2, 32], strides = [1, 1]} : vector<2x128xf32> to vector<2x32xf32>
    %219 = arith.mulf %216, %201 : vector<2x32xf32>
    %220 = arith.mulf %215, %217 : vector<2x32xf32>
    %221 = arith.addf %219, %220 : vector<2x32xf32>
    %222 = math.tanh %221 : vector<2x32xf32>
    %223 = arith.mulf %218, %222 : vector<2x32xf32>
    %224 = vector.extract_strided_slice %12 {offsets = [2, 0], sizes = [1, 32], strides = [1, 1]} : vector<8x32xf32> to vector<1x32xf32>
    %225 = vector.broadcast %224 : vector<1x32xf32> to vector<2x32xf32>
    %226 = arith.mulf %223, %225 : vector<2x32xf32>
    %227 = arith.addf %207, %226 : vector<2x32xf32>
    %228 = vector.extract_strided_slice %164 {offsets = [6, 0], sizes = [2, 128], strides = [1, 1]} : vector<16x128xf32> to vector<2x128xf32>
    %cst_44 = arith.constant dense<0.000000e+00> : vector<2x128xf32>
    %229 = tpu.matmul %223, %159, %cst_44 {dimension_numbers = #tpu.dot_dimension_numbers<[1], [0], [0], [1], [0, 0, 1, 1], [], []>} : vector<2x32xf32>, vector<32x128xf32>, vector<2x128xf32> -> vector<2x128xf32>
    %230 = arith.addf %228, %229 : vector<2x128xf32>
    %231 = arith.mulf %230, %8 : vector<2x128xf32>
    %232 = math.tanh %231 : vector<2x128xf32>
    %233 = arith.mulf %232, %8 : vector<2x128xf32>
    %234 = arith.addf %233, %11 : vector<2x128xf32>
    %235 = vector.extract_strided_slice %234 {offsets = [0, 0], sizes = [2, 32], strides = [1, 1]} : vector<2x128xf32> to vector<2x32xf32>
    %236 = vector.extract_strided_slice %234 {offsets = [0, 32], sizes = [2, 32], strides = [1, 1]} : vector<2x128xf32> to vector<2x32xf32>
    %237 = vector.extract_strided_slice %234 {offsets = [0, 64], sizes = [2, 32], strides = [1, 1]} : vector<2x128xf32> to vector<2x32xf32>
    %238 = vector.extract_strided_slice %234 {offsets = [0, 96], sizes = [2, 32], strides = [1, 1]} : vector<2x128xf32> to vector<2x32xf32>
    %239 = arith.mulf %236, %221 : vector<2x32xf32>
    %240 = arith.mulf %235, %237 : vector<2x32xf32>
    %241 = arith.addf %239, %240 : vector<2x32xf32>
    %242 = math.tanh %241 : vector<2x32xf32>
    %243 = arith.mulf %238, %242 : vector<2x32xf32>
    %244 = vector.extract_strided_slice %12 {offsets = [3, 0], sizes = [1, 32], strides = [1, 1]} : vector<8x32xf32> to vector<1x32xf32>
    %245 = vector.broadcast %244 : vector<1x32xf32> to vector<2x32xf32>
    %246 = arith.mulf %243, %245 : vector<2x32xf32>
    %247 = arith.addf %227, %246 : vector<2x32xf32>
    %248 = vector.extract_strided_slice %164 {offsets = [8, 0], sizes = [2, 128], strides = [1, 1]} : vector<16x128xf32> to vector<2x128xf32>
    %cst_45 = arith.constant dense<0.000000e+00> : vector<2x128xf32>
    %249 = tpu.matmul %243, %159, %cst_45 {dimension_numbers = #tpu.dot_dimension_numbers<[1], [0], [0], [1], [0, 0, 1, 1], [], []>} : vector<2x32xf32>, vector<32x128xf32>, vector<2x128xf32> -> vector<2x128xf32>
    %250 = arith.addf %248, %249 : vector<2x128xf32>
    %251 = arith.mulf %250, %8 : vector<2x128xf32>
    %252 = math.tanh %251 : vector<2x128xf32>
    %253 = arith.mulf %252, %8 : vector<2x128xf32>
    %254 = arith.addf %253, %11 : vector<2x128xf32>
    %255 = vector.extract_strided_slice %254 {offsets = [0, 0], sizes = [2, 32], strides = [1, 1]} : vector<2x128xf32> to vector<2x32xf32>
    %256 = vector.extract_strided_slice %254 {offsets = [0, 32], sizes = [2, 32], strides = [1, 1]} : vector<2x128xf32> to vector<2x32xf32>
    %257 = vector.extract_strided_slice %254 {offsets = [0, 64], sizes = [2, 32], strides = [1, 1]} : vector<2x128xf32> to vector<2x32xf32>
    %258 = vector.extract_strided_slice %254 {offsets = [0, 96], sizes = [2, 32], strides = [1, 1]} : vector<2x128xf32> to vector<2x32xf32>
    %259 = arith.mulf %256, %241 : vector<2x32xf32>
    %260 = arith.mulf %255, %257 : vector<2x32xf32>
    %261 = arith.addf %259, %260 : vector<2x32xf32>
    %262 = math.tanh %261 : vector<2x32xf32>
    %263 = arith.mulf %258, %262 : vector<2x32xf32>
    %264 = vector.extract_strided_slice %12 {offsets = [4, 0], sizes = [1, 32], strides = [1, 1]} : vector<8x32xf32> to vector<1x32xf32>
    %265 = vector.broadcast %264 : vector<1x32xf32> to vector<2x32xf32>
    %266 = arith.mulf %263, %265 : vector<2x32xf32>
    %267 = arith.addf %247, %266 : vector<2x32xf32>
    %268 = vector.extract_strided_slice %164 {offsets = [10, 0], sizes = [2, 128], strides = [1, 1]} : vector<16x128xf32> to vector<2x128xf32>
    %cst_46 = arith.constant dense<0.000000e+00> : vector<2x128xf32>
    %269 = tpu.matmul %263, %159, %cst_46 {dimension_numbers = #tpu.dot_dimension_numbers<[1], [0], [0], [1], [0, 0, 1, 1], [], []>} : vector<2x32xf32>, vector<32x128xf32>, vector<2x128xf32> -> vector<2x128xf32>
    %270 = arith.addf %268, %269 : vector<2x128xf32>
    %271 = arith.mulf %270, %8 : vector<2x128xf32>
    %272 = math.tanh %271 : vector<2x128xf32>
    %273 = arith.mulf %272, %8 : vector<2x128xf32>
    %274 = arith.addf %273, %11 : vector<2x128xf32>
    %275 = vector.extract_strided_slice %274 {offsets = [0, 0], sizes = [2, 32], strides = [1, 1]} : vector<2x128xf32> to vector<2x32xf32>
    %276 = vector.extract_strided_slice %274 {offsets = [0, 32], sizes = [2, 32], strides = [1, 1]} : vector<2x128xf32> to vector<2x32xf32>
    %277 = vector.extract_strided_slice %274 {offsets = [0, 64], sizes = [2, 32], strides = [1, 1]} : vector<2x128xf32> to vector<2x32xf32>
    %278 = vector.extract_strided_slice %274 {offsets = [0, 96], sizes = [2, 32], strides = [1, 1]} : vector<2x128xf32> to vector<2x32xf32>
    %279 = arith.mulf %276, %261 : vector<2x32xf32>
    %280 = arith.mulf %275, %277 : vector<2x32xf32>
    %281 = arith.addf %279, %280 : vector<2x32xf32>
    %282 = math.tanh %281 : vector<2x32xf32>
    %283 = arith.mulf %278, %282 : vector<2x32xf32>
    %284 = vector.extract_strided_slice %12 {offsets = [5, 0], sizes = [1, 32], strides = [1, 1]} : vector<8x32xf32> to vector<1x32xf32>
    %285 = vector.broadcast %284 : vector<1x32xf32> to vector<2x32xf32>
    %286 = arith.mulf %283, %285 : vector<2x32xf32>
    %287 = arith.addf %267, %286 : vector<2x32xf32>
    %288 = vector.extract_strided_slice %164 {offsets = [12, 0], sizes = [2, 128], strides = [1, 1]} : vector<16x128xf32> to vector<2x128xf32>
    %cst_47 = arith.constant dense<0.000000e+00> : vector<2x128xf32>
    %289 = tpu.matmul %283, %159, %cst_47 {dimension_numbers = #tpu.dot_dimension_numbers<[1], [0], [0], [1], [0, 0, 1, 1], [], []>} : vector<2x32xf32>, vector<32x128xf32>, vector<2x128xf32> -> vector<2x128xf32>
    %290 = arith.addf %288, %289 : vector<2x128xf32>
    %291 = arith.mulf %290, %8 : vector<2x128xf32>
    %292 = math.tanh %291 : vector<2x128xf32>
    %293 = arith.mulf %292, %8 : vector<2x128xf32>
    %294 = arith.addf %293, %11 : vector<2x128xf32>
    %295 = vector.extract_strided_slice %294 {offsets = [0, 0], sizes = [2, 32], strides = [1, 1]} : vector<2x128xf32> to vector<2x32xf32>
    %296 = vector.extract_strided_slice %294 {offsets = [0, 32], sizes = [2, 32], strides = [1, 1]} : vector<2x128xf32> to vector<2x32xf32>
    %297 = vector.extract_strided_slice %294 {offsets = [0, 64], sizes = [2, 32], strides = [1, 1]} : vector<2x128xf32> to vector<2x32xf32>
    %298 = vector.extract_strided_slice %294 {offsets = [0, 96], sizes = [2, 32], strides = [1, 1]} : vector<2x128xf32> to vector<2x32xf32>
    %299 = arith.mulf %296, %281 : vector<2x32xf32>
    %300 = arith.mulf %295, %297 : vector<2x32xf32>
    %301 = arith.addf %299, %300 : vector<2x32xf32>
    %302 = math.tanh %301 : vector<2x32xf32>
    %303 = arith.mulf %298, %302 : vector<2x32xf32>
    %304 = vector.extract_strided_slice %12 {offsets = [6, 0], sizes = [1, 32], strides = [1, 1]} : vector<8x32xf32> to vector<1x32xf32>
    %305 = vector.broadcast %304 : vector<1x32xf32> to vector<2x32xf32>
    %306 = arith.mulf %303, %305 : vector<2x32xf32>
    %307 = arith.addf %287, %306 : vector<2x32xf32>
    %308 = vector.extract_strided_slice %164 {offsets = [14, 0], sizes = [2, 128], strides = [1, 1]} : vector<16x128xf32> to vector<2x128xf32>
    %cst_48 = arith.constant dense<0.000000e+00> : vector<2x128xf32>
    %309 = tpu.matmul %303, %159, %cst_48 {dimension_numbers = #tpu.dot_dimension_numbers<[1], [0], [0], [1], [0, 0, 1, 1], [], []>} : vector<2x32xf32>, vector<32x128xf32>, vector<2x128xf32> -> vector<2x128xf32>
    %310 = arith.addf %308, %309 : vector<2x128xf32>
    %311 = arith.mulf %310, %8 : vector<2x128xf32>
    %312 = math.tanh %311 : vector<2x128xf32>
    %313 = arith.mulf %312, %8 : vector<2x128xf32>
    %314 = arith.addf %313, %11 : vector<2x128xf32>
    %315 = vector.extract_strided_slice %314 {offsets = [0, 0], sizes = [2, 32], strides = [1, 1]} : vector<2x128xf32> to vector<2x32xf32>
    %316 = vector.extract_strided_slice %314 {offsets = [0, 32], sizes = [2, 32], strides = [1, 1]} : vector<2x128xf32> to vector<2x32xf32>
    %317 = vector.extract_strided_slice %314 {offsets = [0, 64], sizes = [2, 32], strides = [1, 1]} : vector<2x128xf32> to vector<2x32xf32>
    %318 = vector.extract_strided_slice %314 {offsets = [0, 96], sizes = [2, 32], strides = [1, 1]} : vector<2x128xf32> to vector<2x32xf32>
    %319 = arith.mulf %316, %301 : vector<2x32xf32>
    %320 = arith.mulf %315, %317 : vector<2x32xf32>
    %321 = arith.addf %319, %320 : vector<2x32xf32>
    %322 = math.tanh %321 : vector<2x32xf32>
    %323 = arith.mulf %318, %322 : vector<2x32xf32>
    %324 = vector.extract_strided_slice %12 {offsets = [7, 0], sizes = [1, 32], strides = [1, 1]} : vector<8x32xf32> to vector<1x32xf32>
    %325 = vector.broadcast %324 : vector<1x32xf32> to vector<2x32xf32>
    %326 = arith.mulf %323, %325 : vector<2x32xf32>
    %327 = arith.addf %307, %326 : vector<2x32xf32>
    %cst_49 = arith.constant dense<0.000000e+00> : vector<2xf32>
    %328 = vector.multi_reduction <add>, %327, %cst_49 [1] : vector<2x32xf32> to vector<2xf32>
    %329 = vector.shape_cast %328 : vector<2xf32> to vector<2x1xf32>
    %c0_50 = arith.constant 0 : index
    %330 = memref.load %arg5[%c0_50] : memref<1xf32, #tpu.memory_space<smem>>
    %331 = vector.broadcast %330 : f32 to vector<2x1xf32>
    %332 = arith.addf %329, %331 : vector<2x1xf32>
    %c0_51 = arith.constant 0 : index
    %c0_52 = arith.constant 0 : index
    %333 = vector.load %arg6[%c0_51, %c0_52] : memref<2x1xf32, #tpu.memory_space<vmem>>, vector<2x1xf32>
    tpu.vector_store %arg6[%c0_51, %c0_52], %332 {strides = array<i32>} : memref<2x1xf32, #tpu.memory_space<vmem>>, vector<2x1xf32>,
    return
  }
  func.func @transform_0(%arg0: i32) -> (i32, i32) {
    %c0_i32 = arith.constant 0 : i32
    %c0_i32_0 = arith.constant 0 : i32
    %c0_i32_1 = arith.constant 0 : i32
    return %c0_i32, %c0_i32_0 : i32, i32
  }
  func.func @transform_1(%arg0: i32) -> (i32, i32) {
    %c0_i32 = arith.constant 0 : i32
    %c0_i32_0 = arith.constant 0 : i32
    %c0_i32_1 = arith.constant 0 : i32
    return %c0_i32, %c0_i32_0 : i32, i32
  }
  func.func @transform_2(%arg0: i32) -> (i32, i32) {
    %c0_i32 = arith.constant 0 : i32
    %c0_i32_0 = arith.constant 0 : i32
    %c0_i32_1 = arith.constant 0 : i32
    return %c0_i32, %c0_i32_0 : i32, i32
  }
  func.func @transform_3(%arg0: i32) -> (i32, i32) {
    %c0_i32 = arith.constant 0 : i32
    %c0_i32_0 = arith.constant 0 : i32
    %c0_i32_1 = arith.constant 0 : i32
    return %c0_i32, %c0_i32_0 : i32, i32
  }
  func.func @transform_4(%arg0: i32) -> i32 {
    %c0_i32 = arith.constant 0 : i32
    %c0_i32_0 = arith.constant 0 : i32
    return %c0_i32 : i32
  }
  func.func @transform_5(%arg0: i32) -> (i32, i32) {
    %c0_i32 = arith.constant 0 : i32
    %c0_i32_0 = arith.constant 0 : i32
    %c0_i32_1 = arith.constant 0 : i32
    return %c0_i32, %c0_i32_0 : i32, i32
  }
}

</mosaic_0001>

<bundles_post_ra>
// kernel: har_lstm_forward.1
= control target key start
LH: loop header
LB: loop body
LE: loop exit
PB: predicated region body
PF: predicated region fallthrough
CT: control target
= control target key end

     0   :  { %11 = vsyncpa [#allocation5], 0  ;;  %s2411_s18 = smov [#allocation4]   ;;  %s2880_s0 = inlined_call_operand.vmem [shape: f32[16,8], index: 0, kind: input, shape index: {}]   ;;  %s2881_s1 = inlined_call_operand.vmem [shape: f32[48,128], index: 1, kind: input, shape index: {}]   ;;  %s2882_s2 = inlined_call_operand.hbm [shape: f32[72,128], index: 2, kind: input, shape index: {}]   ;;  %s2883_s3 = inlined_call_operand.vmem [shape: f32[8,32], index: 3, kind: input, shape index: {}]   ;;  %s2884_s4 = inlined_call_operand.<no memory space> [shape: f32[1], index: 4, kind: input, shape index: {}]   ;;  %s2885_s5 = inlined_call_operand.vmem [shape: f32[2,1], index: 5, kind: output, shape index: {}]  }
   0x1   :  { %s21_s19 = sshll.u32 %s2411_s18, 4  ;;  %s22_s19 = int_to_ptr.vmem [resolvable:$true] %s21_s19 }
   0x2   :  { %s2397_s20 = scalar_lea.vmem %s22_s19, 1152  ;;  %p2402_p1 = scmp.lt.s32.totalorder %s22_s19, %s22_s19 }
   0x3   :  { %p2398_p0 = scmp.ne.s32.totalorder %s22_s19, %s2397_s20  ;;  %p2403_p2 = scmp.lt.s32.totalorder %s2397_s20, %s2397_s20 }
   0x5   :  { %p2404_p3 = por %p2403_p2, %p2402_p1 }
   0x7   :  { %p2405_p4 = pnand %p2404_p3, %p2398_p0 }
   0x9   :  { %2408 = shalt.err (!%p2405_p4)
}
   0xa   :  { %s2412_s21 = smov 128   ;;  %s2413_s22 = smov 8  }
   0xb   :  { %27 = dma.hbm_to_vmem [thread:$0]  %s2882_s2, 1152, %s22_s19, [#allocation5], %s2412_s21, %s2412_s21, %s2413_s22  }
   0xc   :  { %2409 = dma.done.wait [#allocation5], 1152  }
   0xd   :  { %2410 = vsyncadd [#allocation5], 4294966144  ;;  %v2414_v0 = vmov 0.0   ;;  %vm2415_vm0 = vmmov 0   ;;  %vm55_vm1 = vcmask 64512   ;;  %v43_v1 = vld [vmem:[%s2881_s1] sm:$0xff]  ;;  %v35_v8 = vlaneseq }
   0xe   :  { %2129 = vmatprep.subr.mxu1 %v2414_v0  ;;  %2137 = vmatprep.mubr.msk.f32.mxu1 %vm2415_vm0, %v2414_v0  ;;  %v2462_v2 = vld [vmem:[%s2881_s1 + $0x20] sm:$0xff]  ;;  %v50_v4 = vld [vmem:[%s2880_s0 + $0x8] sm:$0xff]  ;;  %v2474_v5 = vld [vmem:[%s2881_s1 + $0x18] sm:$0xff]  ;;  %v2416_v15 = vmov 0.5   ;;  %s2418_s14 = smov 32   ;;  %vm237_vm5 = vcmask 254976  }
   0xf   :  { %v49_v3 = vld [vmem:[%s2880_s0] sm:$0xff]  ;;  %2124 = vmatprep.subr.mxu0 %v43_v1  ;;  %2130 = vmatpush3.msra.mxu1 %v2462_v2  ;;  %v2480_v6 = vld [vmem:[%s2881_s1 + $0x10] sm:$0xff]  ;;  %v2488_v7 = vld [vmem:[%s2881_s1 + $0x8] sm:$0xff]  ;;  %v36_v9 = vand.u32 127, %v35_v8  ;;  %vm137_vm6 = vcmask 261120   ;;  %vm343_vm7 = vcmask 257026  }
  0x10   :  { %2125 = vmatpush3.msra.mxu0 %v43_v1  ;;  %2126 = vmatprep.mubr.msk.f32.mxu0 %vm55_vm1, %v49_v3  ;;  %v2015_v10 = vld [vmem:[%s2881_s1 + $0x28] ss:$0 sm:$0xff]  ;;  %s2417_s1 = smov 64   ;;  %vm561_vm8 = vcmask 261126   ;;  %vm452_vm9 = vcmask 259076   ;;  %s2419_s17 = smov 96  }
  0x11   :  { %2131 = vmatprep.subr.mxu1 %v2414_v0  ;;  %2127 = vmatmul.mubr.msk.f32.vlgmr.msra.gmra.mxu0 %vm55_vm1, %v50_v4  ;;  %vm37_vm2 = vcmp.ge.s32.totalorder %v36_v9, 64  ;;  %vm38_vm3 = vcmp.lt.s32.totalorder %v36_v9, 96  ;;  %vm2008_vm10 = vcmask 1024  }
  0x12   :  { %2132 = vmatpush3.msra.mxu1 %v2474_v5  ;;  %2140 = vmatprep.subr.mxu0 %v2414_v0  ;;  %vm39_vm4 = vmand %vm37_vm2, %vm38_vm3 }
  0x13   :  { %2133 = vmatprep.subr.mxu1 %v2414_v0  ;;  %2141 = vmatpush3.msra.mxu0 %v2462_v2  ;;  %v2523_v16 = vsel %vm39_vm4, 1.0, %v2416_v15  ;;  %v2527_v22 = vsel %vm39_vm4, 0.0, %v2416_v15 }
  0x14   :  { %2134 = vmatpush3.msra.mxu1 %v2480_v6  ;;  %2142 = vmatprep.subr.mxu0 %v2414_v0 }
  0x15   :  { %2135 = vmatprep.subr.mxu1 %v2414_v0  ;;  %2143 = vmatpush3.msra.mxu0 %v2474_v5 }
  0x16   :  { %2136 = vmatpush3.msra.mxu1 %v2488_v7  ;;  %2144 = vmatprep.subr.mxu0 %v2414_v0 }
  0x17   :  { %2138 = vmatmul.mubr.f32.vlgmr.msra.gmra.mxu1 %v2414_v0  ;;  %2145 = vmatpush3.msra.mxu0 %v2480_v6 }
  0x18   :  { %2146 = vmatprep.subr.mxu0 %v2414_v0  ;;  %2148 = vmatprep.mubr.msk.f32.mxu0 %vm2415_vm0, %v2414_v0 }
  0x19   :  { %2147 = vmatpush3.msra.mxu0 %v2488_v7  ;;  %2151 = vmatprep.subr.mxu1 %v2414_v0 }
  0x1a   :  { %2152 = vmatpush3.msra.mxu1 %v2462_v2  ;;  %2159 = vmatprep.mubr.msk.f32.mxu1 %vm2415_vm0, %v2414_v0 }
  0x1b   :  { %2153 = vmatprep.subr.mxu1 %v2414_v0  ;;  %2162 = vmatprep.subr.mxu0 %v2414_v0 }
  0x1c   :  { %2154 = vmatpush3.msra.mxu1 %v2474_v5 }
  0x1d   :  { %2155 = vmatprep.subr.mxu1 %v2414_v0 }
  0x1e   :  { %2156 = vmatpush3.msra.mxu1 %v2480_v6 }
  0x1f   :  { %2157 = vmatprep.subr.mxu1 %v2414_v0 }
  0x20   :  { %2158 = vmatpush3.msra.mxu1 %v2488_v7 }
  0x21   :  { %2173 = vmatprep.subr.mxu1 %v2414_v0 }
  0xd1   :  { %v2128_v11 = vpop.f32.mrf.mxu0 }
  0xd2   :  { %v2519_v12 = vadd.f32 %v2128_v11, %v2015_v10 }
  0xd3   :  { %v128_v13 = vpop.f32.mrf.mxu0 }
  0xd4   :  { %v2521_v14 = vadd.f32 %v2015_v10, %v128_v13 }
  0xd7   :  { %v207_v17 = vpop.f32.mrf.mxu1 }
  0xd8   :  { %v211_v18 = vadd.f32 %v207_v17, %v2521_v14 }
  0xd9   :  { %v2139_v19 = vpop.f32.mrf.mxu1 }
  0xda   :  { %v212_v20 = vmul.f32 %v211_v18, %v2523_v16 }
  0xdc   :  { %2325 = vtanh.f32 %v212_v20 }
  0xe9   :  { %v2326_v21 = vpop.eup %2325 }
  0xea   :  { %v214_v23 = vmul.f32 %v2326_v21, %v2523_v16 }
  0xec   :  { %v215_v24 = vadd.f32 %v214_v23, %v2527_v22 }
  0xee   :  { %218 = vrot.lane.b32.xlu0 %v215_v24, %s2417_s1  ;;  %v216_v27 = vmul.f32 0.0, %v215_v24 }
 0x160   :  { %v219_v25 = vpop.permute.xlu0 %218 }
 0x161   :  { %v221_v26 = vmul.f32 %v219_v25, %v215_v24 }
 0x163   :  { %223 = vrot.lane.b32.xlu0 %v221_v26, %s2418_s14 }
 0x1d5   :  { %v224_v28 = vpop.permute.xlu0 %223 }
 0x1d6   :  { %v226_v29 = vadd.f32 %v224_v28, %v216_v27 }
 0x1d8   :  { %2327 = vtanh.f32 %v226_v29  ;;  %v320_v44 = vrot.slane %v226_v29, 6 }
 0x1e5   :  { %v2328_v30 = vpop.eup %2327 }
 0x1e6   :  { %229 = vrot.lane.b32.xlu1 %v2328_v30, %s2417_s1 }
 0x258   :  { %v230_v31 = vpop.permute.xlu1 %229 }
 0x259   :  { %v232_v32 = vmul.f32 %v230_v31, %v215_v24 }
 0x25b   :  { %234 = vrot.lane.b32.xlu1 %v232_v32, %s2418_s14 }
 0x2cd   :  { %v235_v33 = vpop.permute.xlu1 %234 }
 0x2ce   :  { %238 = vst.msk [vmem:[#allocation2] sm:$0x3] %vm237_vm5, %v235_v33  ;;  %2149 = vmatmul.mubr.msk.f32.vlgmr.msra.gmra.mxu0 %vm137_vm6, %v235_v33 }
 0x2cf   :  { %2163 = vmatpush3.msra.mxu0 %v2462_v2  ;;  %2170 = vmatprep.mubr.msk.f32.mxu0 %vm2415_vm0, %v2414_v0 }
 0x2d0   :  { %2164 = vmatprep.subr.mxu0 %v2414_v0 }
 0x2d1   :  { %2165 = vmatpush3.msra.mxu0 %v2474_v5 }
 0x2d2   :  { %2166 = vmatprep.subr.mxu0 %v2414_v0 }
 0x2d3   :  { %2167 = vmatpush3.msra.mxu0 %v2480_v6 }
 0x2d4   :  { %2168 = vmatprep.subr.mxu0 %v2414_v0 }
 0x2d5   :  { %2169 = vmatpush3.msra.mxu0 %v2488_v7 }
 0x2d6   :  { %2184 = vmatprep.subr.mxu0 %v2414_v0 }
 0x38e   :  { %v307_v34 = vpop.f32.mrf.mxu0 }
 0x38f   :  { %v312_v35 = vrot.slane %v307_v34, 6 }
 0x390   :  { %v2150_v36 = vpop.f32.mrf.mxu0 }
 0x391   :  { %v314_v37 = vadd.f32 %v312_v35, %v2521_v14 }
 0x393   :  { %v315_v38 = vmul.f32 %v314_v37, %v2523_v16 }
 0x395   :  { %2329 = vtanh.f32 %v315_v38 }
 0x3a2   :  { %v2330_v39 = vpop.eup %2329 }
 0x3a3   :  { %v317_v40 = vmul.f32 %v2330_v39, %v2523_v16 }
 0x3a5   :  { %v318_v41 = vadd.f32 %v317_v40, %v2527_v22 }
 0x3a7   :  { %324 = vrot.lane.b32.xlu0 %v318_v41, %s2417_s1  ;;  %v322_v45 = vmul.f32 %v320_v44, %v318_v41 }
 0x419   :  { %v325_v42 = vpop.permute.xlu0 %324 }
 0x41a   :  { %v327_v43 = vmul.f32 %v325_v42, %v318_v41 }
 0x41c   :  { %329 = vrot.lane.b32.xlu1 %v327_v43, %s2418_s14 }
 0x48e   :  { %v330_v46 = vpop.permute.xlu1 %329 }
 0x48f   :  { %v332_v47 = vadd.f32 %v330_v46, %v322_v45 }
 0x491   :  { %2331 = vtanh.f32 %v332_v47  ;;  %v429_v63 = vrot.slane %v332_v47, 6 }
 0x49e   :  { %v2332_v48 = vpop.eup %2331 }
 0x49f   :  { %335 = vrot.lane.b32.xlu0 %v2332_v48, %s2417_s1 }
 0x511   :  { %v336_v49 = vpop.permute.xlu0 %335 }
 0x512   :  { %v2554_v50 = vmul.f32 %v336_v49, %v318_v41 }
 0x514   :  { %v345_v51 = vrot.slane %v2554_v50, 2 }
 0x516   :  { %346 = vrot.lane.b32.xlu1 %v345_v51, %s2418_s14 }
 0x588   :  { %v347_v52 = vpop.permute.xlu1 %346 }
 0x589   :  { %2160 = vmatmul.mubr.msk.f32.vlgmr.msra.gmra.mxu1 %vm137_vm6, %v347_v52 }
 0x58a   :  { %2174 = vmatpush3.msra.mxu1 %v2462_v2  ;;  %2181 = vmatprep.mubr.msk.f32.mxu1 %vm2415_vm0, %v2414_v0 }
 0x58b   :  { %2175 = vmatprep.subr.mxu1 %v2414_v0 }
 0x58c   :  { %2176 = vmatpush3.msra.mxu1 %v2474_v5 }
 0x58d   :  { %2177 = vmatprep.subr.mxu1 %v2414_v0 }
 0x58e   :  { %2178 = vmatpush3.msra.mxu1 %v2480_v6 }
 0x58f   :  { %2179 = vmatprep.subr.mxu1 %v2414_v0 }
 0x590   :  { %2180 = vmatpush3.msra.mxu1 %v2488_v7 }
 0x591   :  { %2195 = vmatprep.subr.mxu1 %v2414_v0 }
 0x649   :  { %v416_v53 = vpop.f32.mrf.mxu1 }
 0x64a   :  { %v421_v54 = vrot.slane %v416_v53, 4 }
 0x64b   :  { %v2161_v55 = vpop.f32.mrf.mxu1 }
 0x64c   :  { %v423_v56 = vadd.f32 %v421_v54, %v2521_v14 }
 0x64e   :  { %v424_v57 = vmul.f32 %v423_v56, %v2523_v16 }
 0x650   :  { %2333 = vtanh.f32 %v424_v57 }
 0x65d   :  { %v2334_v58 = vpop.eup %2333 }
 0x65e   :  { %v426_v59 = vmul.f32 %v2334_v58, %v2523_v16 }
 0x660   :  { %v427_v60 = vadd.f32 %v426_v59, %v2527_v22 }
 0x662   :  { %433 = vrot.lane.b32.xlu0 %v427_v60, %s2417_s1  ;;  %v431_v1 = vmul.f32 %v429_v63, %v427_v60 }
 0x6d4   :  { %v434_v61 = vpop.permute.xlu0 %433 }
 0x6d5   :  { %v436_v62 = vmul.f32 %v434_v61, %v427_v60 }
 0x6d7   :  { %438 = vrot.lane.b32.xlu1 %v436_v62, %s2418_s14 }
 0x749   :  { %v439_v3 = vpop.permute.xlu1 %438 }
 0x74a   :  { %v441_v4 = vadd.f32 %v439_v3, %v431_v1 }
 0x74c   :  { %2335 = vtanh.f32 %v441_v4  ;;  %v538_v28 = vrot.slane %v441_v4, 6 }
 0x759   :  { %v2336_v9 = vpop.eup %2335 }
 0x75a   :  { %444 = vrot.lane.b32.xlu0 %v2336_v9, %s2417_s1 }
 0x7cc   :  { %v445_v10 = vpop.permute.xlu0 %444 }
 0x7cd   :  { %v2576_v11 = vmul.f32 %v445_v10, %v427_v60 }
 0x7cf   :  { %v454_v13 = vrot.slane %v2576_v11, 4 }
 0x7d1   :  { %455 = vrot.lane.b32.xlu1 %v454_v13, %s2418_s14 }
 0x843   :  { %v456_v15 = vpop.permute.xlu1 %455 }
 0x844   :  { %2171 = vmatmul.mubr.msk.f32.vlgmr.msra.gmra.mxu0 %vm137_vm6, %v456_v15 }
 0x845   :  { %2185 = vmatpush3.msra.mxu0 %v2462_v2  ;;  %2192 = vmatprep.mubr.msk.f32.mxu0 %vm2415_vm0, %v2414_v0 }
 0x846   :  { %2186 = vmatprep.subr.mxu0 %v2414_v0 }
 0x847   :  { %2187 = vmatpush3.msra.mxu0 %v2474_v5 }
 0x848   :  { %2188 = vmatprep.subr.mxu0 %v2414_v0 }
 0x849   :  { %2189 = vmatpush3.msra.mxu0 %v2480_v6 }
 0x84a   :  { %2190 = vmatprep.subr.mxu0 %v2414_v0 }
 0x84b   :  { %2191 = vmatpush3.msra.mxu0 %v2488_v7 }
 0x84c   :  { %2206 = vmatprep.subr.mxu0 %v2414_v0 }
 0x904   :  { %v525_v17 = vpop.f32.mrf.mxu0 }
 0x905   :  { %v530_v18 = vrot.slane %v525_v17, 2 }
 0x906   :  { %v2172_v19 = vpop.f32.mrf.mxu0 }
 0x907   :  { %v532_v20 = vadd.f32 %v530_v18, %v2521_v14 }
 0x909   :  { %v533_v21 = vmul.f32 %v532_v20, %v2523_v16 }
 0x90b   :  { %2337 = vtanh.f32 %v533_v21 }
 0x918   :  { %v2338_v23 = vpop.eup %2337 }
 0x919   :  { %v535_v24 = vmul.f32 %v2338_v23, %v2523_v16 }
 0x91b   :  { %v536_v25 = vadd.f32 %v535_v24, %v2527_v22 }
 0x91d   :  { %542 = vrot.lane.b32.xlu0 %v536_v25, %s2417_s1  ;;  %v540_v29 = vmul.f32 %v538_v28, %v536_v25 }
 0x98f   :  { %v543_v26 = vpop.permute.xlu0 %542 }
 0x990   :  { %v545_v27 = vmul.f32 %v543_v26, %v536_v25 }
 0x992   :  { %547 = vrot.lane.b32.xlu1 %v545_v27, %s2418_s14 }
 0xa04   :  { %v548_v30 = vpop.permute.xlu1 %547 }
 0xa05   :  { %v550_v31 = vadd.f32 %v548_v30, %v540_v29 }
 0xa07   :  { %2339 = vtanh.f32 %v550_v31  ;;  %v644_v45 = vrot.slane %v550_v31, 6 }
 0xa14   :  { %v2340_v14 = vpop.eup %2339 }
 0xa15   :  { %553 = vrot.lane.b32.xlu0 %v2340_v14, %s2417_s1 }
 0xa87   :  { %v554_v32 = vpop.permute.xlu0 %553 }
 0xa88   :  { %v2598_v33 = vmul.f32 %v554_v32, %v536_v25 }
 0xa8a   :  { %v563_v34 = vrot.slane %v2598_v33, 6 }
 0xa8c   :  { %564 = vrot.lane.b32.xlu1 %v563_v34, %s2418_s14 }
 0xafe   :  { %v565_v35 = vpop.permute.xlu1 %564 }
 0xaff   :  { %2182 = vmatmul.mubr.msk.f32.vlgmr.msra.gmra.mxu1 %vm137_vm6, %v565_v35 }
 0xb00   :  { %2196 = vmatpush3.msra.mxu1 %v2462_v2  ;;  %2203 = vmatprep.mubr.msk.f32.mxu1 %vm2415_vm0, %v2414_v0 }
 0xb01   :  { %2197 = vmatprep.subr.mxu1 %v2414_v0 }
 0xb02   :  { %2198 = vmatpush3.msra.mxu1 %v2474_v5 }
 0xb03   :  { %2199 = vmatprep.subr.mxu1 %v2414_v0 }
 0xb04   :  { %2200 = vmatpush3.msra.mxu1 %v2480_v6 }
 0xb05   :  { %2201 = vmatprep.subr.mxu1 %v2414_v0 }
 0xb06   :  { %2202 = vmatpush3.msra.mxu1 %v2488_v7 }
 0xbbf   :  { %v634_v36 = vpop.f32.mrf.mxu1 }
 0xbc0   :  { %v638_v37 = vadd.f32 %v634_v36, %v2519_v12 }
 0xbc1   :  { %v2183_v38 = vpop.f32.mrf.mxu1 }
 0xbc2   :  { %v639_v39 = vmul.f32 %v638_v37, %v2523_v16 }
 0xbc4   :  { %2341 = vtanh.f32 %v639_v39 }
 0xbd1   :  { %v2342_v40 = vpop.eup %2341 }
 0xbd2   :  { %v641_v41 = vmul.f32 %v2342_v40, %v2523_v16 }
 0xbd4   :  { %v642_v42 = vadd.f32 %v641_v41, %v2527_v22 }
 0xbd6   :  { %648 = vrot.lane.b32.xlu0 %v642_v42, %s2417_s1  ;;  %v646_v46 = vmul.f32 %v644_v45, %v642_v42 }
 0xc48   :  { %v649_v43 = vpop.permute.xlu0 %648 }
 0xc49   :  { %v651_v44 = vmul.f32 %v649_v43, %v642_v42 }
 0xc4b   :  { %653 = vrot.lane.b32.xlu1 %v651_v44, %s2418_s14 }
 0xcbd   :  { %v654_v47 = vpop.permute.xlu1 %653 }
 0xcbe   :  { %v656_v48 = vadd.f32 %v654_v47, %v646_v46 }
 0xcc0   :  { %2343 = vtanh.f32 %v656_v48 }
 0xccd   :  { %v2344_v49 = vpop.eup %2343 }
 0xcce   :  { %659 = vrot.lane.b32.xlu0 %v2344_v49, %s2417_s1 }
 0xd40   :  { %v660_v51 = vpop.permute.xlu0 %659 }
 0xd41   :  { %v662_v52 = vmul.f32 %v660_v51, %v642_v42  ;;  %v992_v51 = vld [vmem:[#allocation4 + $0x18] sm:$0xff] }
 0xd42   :  { %2217 = vmatprep.subr.mxu1 %v992_v51 }
 0xd43   :  { %664 = vrot.lane.b32.xlu1 %v662_v52, %s2418_s14  ;;  %v991_v52 = vld [vmem:[#allocation4 + $0x10] sm:$0xff] }
 0xdb5   :  { %v665_v53 = vpop.permute.xlu1 %664 }
 0xdb6   :  { %667 = vst.msk [vmem:[#allocation2 + $0x8] sm:$0x3] %vm237_vm5, %v665_v53  ;;  %2193 = vmatmul.mubr.msk.f32.vlgmr.msra.gmra.mxu0 %vm137_vm6, %v665_v53  ;;  %v2674_v53 = vld [vmem:[#allocation4 + $0x38] sm:$0xff] }
 0xdb7   :  { %2207 = vmatpush3.msra.mxu0 %v2462_v2  ;;  %2214 = vmatprep.mubr.msk.f32.mxu0 %vm2415_vm0, %v2414_v0 }
 0xdb8   :  { %2208 = vmatprep.subr.mxu0 %v2414_v0 }
 0xdb9   :  { %2209 = vmatpush3.msra.mxu0 %v2474_v5 }
 0xdba   :  { %2210 = vmatprep.subr.mxu0 %v2414_v0 }
 0xdbb   :  { %2211 = vmatpush3.msra.mxu0 %v2480_v6 }
 0xdbc   :  { %2212 = vmatprep.subr.mxu0 %v2414_v0 }
 0xdbd   :  { %2213 = vmatpush3.msra.mxu0 %v2488_v7  ;;  %v749_v7 = vrot.slane %v656_v48, 6 }
 0xdbe   :  { %2228 = vmatprep.subr.mxu0 %v2414_v0 }
 0xe76   :  { %v736_v54 = vpop.f32.mrf.mxu0 }
 0xe77   :  { %v741_v55 = vrot.slane %v736_v54, 6  ;;  %v990_v54 = vld [vmem:[#allocation4 + $0x8] sm:$0xff] }
 0xe78   :  { %v2194_v2 = vpop.f32.mrf.mxu0 }
 0xe79   :  { %v743_v56 = vadd.f32 %v741_v55, %v2519_v12  ;;  %v2677_v55 = vld [vmem:[#allocation4 + $0x30] sm:$0xff]  ;;  %v2680_v2 = vld [vmem:[#allocation4 + $0x28] sm:$0xff] }
 0xe7b   :  { %v744_v57 = vmul.f32 %v743_v56, %v2523_v16  ;;  %v2686_v56 = vld [vmem:[#allocation4 + $0x20] sm:$0xff] }
 0xe7d   :  { %2345 = vtanh.f32 %v744_v57 }
 0xe8a   :  { %v2346_v58 = vpop.eup %2345 }
 0xe8b   :  { %v746_v5 = vmul.f32 %v2346_v58, %v2523_v16 }
 0xe8d   :  { %v747_v59 = vadd.f32 %v746_v5, %v2527_v22 }
 0xe8f   :  { %753 = vrot.lane.b32.xlu0 %v747_v59, %s2417_s1  ;;  %v751_v61 = vmul.f32 %v749_v7, %v747_v59 }
 0xf01   :  { %v754_v6 = vpop.permute.xlu0 %753 }
 0xf02   :  { %v756_v60 = vmul.f32 %v754_v6, %v747_v59 }
 0xf04   :  { %758 = vrot.lane.b32.xlu1 %v756_v60, %s2418_s14 }
 0xf76   :  { %v759_v62 = vpop.permute.xlu1 %758 }
 0xf77   :  { %v761_v63 = vadd.f32 %v759_v62, %v751_v61 }
 0xf79   :  { %2347 = vtanh.f32 %v761_v63  ;;  %v857_v26 = vrot.slane %v761_v63, 6  ;;  %v2025_v63 = vld [vmem:[#allocation4 + $0x40] ss:$0 sm:$0xff] }
 0xf86   :  { %v2348_v1 = vpop.eup %2347 }
 0xf87   :  { %764 = vrot.lane.b32.xlu0 %v2348_v1, %s2417_s1 }
 0xff9   :  { %v765_v3 = vpop.permute.xlu0 %764 }
 0xffa   :  { %v2639_v4 = vmul.f32 %v765_v3, %v747_v59 }
 0xffc   :  { %v773_v9 = vrot.slane %v2639_v4, 2 }
 0xffe   :  { %774 = vrot.lane.b32.xlu1 %v773_v9, %s2418_s14 }
0x1070   :  { %v775_v10 = vpop.permute.xlu1 %774 }
0x1071   :  { %2204 = vmatmul.mubr.msk.f32.vlgmr.msra.gmra.mxu1 %vm137_vm6, %v775_v10 }
0x1072   :  { %2218 = vmatpush3.msra.mxu1 %v992_v51 }
0x1073   :  { %2219 = vmatprep.subr.mxu1 %v991_v52 }
0x1074   :  { %2220 = vmatpush3.msra.mxu1 %v991_v52 }
0x1075   :  { %2221 = vmatprep.subr.mxu1 %v990_v54 }
0x1076   :  { %2222 = vmatpush3.msra.mxu1 %v990_v54 }
0x1131   :  { %v844_v13 = vpop.f32.mrf.mxu1 }
0x1132   :  { %v849_v15 = vrot.slane %v844_v13, 4 }
0x1133   :  { %v2205_v17 = vpop.f32.mrf.mxu1 }
0x1134   :  { %v851_v18 = vadd.f32 %v849_v15, %v2519_v12 }
0x1136   :  { %v852_v19 = vmul.f32 %v851_v18, %v2523_v16 }
0x1138   :  { %2349 = vtanh.f32 %v852_v19 }
0x1145   :  { %v2350_v20 = vpop.eup %2349 }
0x1146   :  { %v854_v21 = vmul.f32 %v2350_v20, %v2523_v16 }
0x1148   :  { %v855_v23 = vadd.f32 %v854_v21, %v2527_v22 }
0x114a   :  { %861 = vrot.lane.b32.xlu0 %v855_v23, %s2417_s1  ;;  %v859_v27 = vmul.f32 %v857_v26, %v855_v23 }
0x11bc   :  { %v862_v24 = vpop.permute.xlu0 %861 }
0x11bd   :  { %v864_v25 = vmul.f32 %v862_v24, %v855_v23 }
0x11bf   :  { %866 = vrot.lane.b32.xlu1 %v864_v25, %s2418_s14 }
0x1231   :  { %v867_v28 = vpop.permute.xlu1 %866 }
0x1232   :  { %v869_v29 = vadd.f32 %v867_v28, %v859_v27 }
0x1234   :  { %2351 = vtanh.f32 %v869_v29 }
0x1241   :  { %v2352_v30 = vpop.eup %2351 }
0x1242   :  { %872 = vrot.lane.b32.xlu0 %v2352_v30, %s2417_s1 }
0x12b4   :  { %v873_v31 = vpop.permute.xlu0 %872 }
0x12b5   :  { %v875_v14 = vmul.f32 %v873_v31, %v855_v23 }
0x12b7   :  { %v881_v32 = vrot.slane %v875_v14, 4 }
0x12b9   :  { %882 = vrot.lane.b32.xlu1 %v881_v32, %s2418_s14 }
0x132b   :  { %v883_v34 = vpop.permute.xlu1 %882 }
0x132c   :  { %2215 = vmatmul.mubr.msk.f32.vlgmr.msra.gmra.mxu0 %vm137_vm6, %v883_v34 }
0x132d   :  { %2236 = vmatprep.mubr.msk.f32.mxu0 %vm2415_vm0, %v2414_v0  ;;  %2229 = vmatpush3.msra.mxu0 %v2674_v53 }
0x132e   :  { %2230 = vmatprep.subr.mxu0 %v2414_v0 }
0x132f   :  { %2231 = vmatpush3.msra.mxu0 %v2677_v55 }
0x1330   :  { %2232 = vmatprep.subr.mxu0 %v2414_v0 }
0x1331   :  { %2233 = vmatpush3.msra.mxu0 %v2680_v2 }
0x1332   :  { %2234 = vmatprep.subr.mxu0 %v2414_v0 }
0x1333   :  { %2235 = vmatpush3.msra.mxu0 %v2686_v56 }
0x1334   :  { %2237 = vmatmul.mubr.f32.vlgmr.msra.gmra.mxu0 %v2414_v0  ;;  %2250 = vmatprep.subr.mxu0 %v2414_v0 }
0x1335   :  { %2251 = vmatpush3.msra.mxu0 %v2674_v53  ;;  %2258 = vmatprep.mubr.msk.f32.mxu0 %vm2415_vm0, %v2414_v0 }
0x1336   :  { %2252 = vmatprep.subr.mxu0 %v2414_v0 }
0x1337   :  { %2253 = vmatpush3.msra.mxu0 %v2677_v55 }
0x1338   :  { %2254 = vmatprep.subr.mxu0 %v2414_v0 }
0x1339   :  { %2255 = vmatpush3.msra.mxu0 %v2680_v2 }
0x133a   :  { %2256 = vmatprep.subr.mxu0 %v2414_v0 }
0x133b   :  { %2257 = vmatpush3.msra.mxu0 %v2686_v56 }
0x133c   :  { %2272 = vmatprep.subr.mxu0 %v2414_v0 }
0x13ec   :  { %v952_v35 = vpop.f32.mrf.mxu0 }
0x13ed   :  { %v957_v36 = vrot.slane %v952_v35, 2 }
0x13ee   :  { %v2216_v37 = vpop.f32.mrf.mxu0 }
0x13ef   :  { %v959_v38 = vadd.f32 %v957_v36, %v2519_v12  ;;  %v965_v12 = vrot.slane %v869_v29, 6 }
0x13f1   :  { %v960_v39 = vmul.f32 %v959_v38, %v2523_v16 }
0x13f3   :  { %2353 = vtanh.f32 %v960_v39 }
0x13f4   :  { %v1151_v61 = vpop.f32.mrf.mxu0 }
0x13f6   :  { %v2238_v62 = vpop.f32.mrf.mxu0 }
0x1400   :  { %v2354_v40 = vpop.eup %2353 }
0x1401   :  { %v962_v41 = vmul.f32 %v2354_v40, %v2523_v16 }
0x1403   :  { %v963_v42 = vadd.f32 %v962_v41, %v2527_v22 }
0x1405   :  { %969 = vrot.lane.b32.xlu0 %v963_v42, %s2417_s1  ;;  %v967_v45 = vmul.f32 %v965_v12, %v963_v42 }
0x1477   :  { %v970_v43 = vpop.permute.xlu0 %969 }
0x1478   :  { %v972_v44 = vmul.f32 %v970_v43, %v963_v42 }
0x147a   :  { %974 = vrot.lane.b32.xlu1 %v972_v44, %s2418_s14 }
0x147e   :  { %340 = vrot.lane.b32.xlu1 %v2554_v50, %s2418_s14 }
0x1482   :  { %558 = vrot.lane.b32.xlu1 %v2598_v33, %s2418_s14 }
0x1486   :  { %877 = vrot.lane.b32.xlu1 %v875_v14, %s2418_s14 }
0x14ec   :  { %v975_v46 = vpop.permute.xlu1 %974 }
0x14ed   :  { %v977_v47 = vadd.f32 %v975_v46, %v967_v45 }
0x14ef   :  { %2355 = vtanh.f32 %v977_v47 }
0x14f0   :  { %v341_v48 = vpop.permute.xlu1 %340 }
0x14f1   :  { %344 = vst.msk [vmem:[#allocation2] sm:$0xc] %vm343_vm7, %v341_v48 }
0x14f4   :  { %v559_v49 = vpop.permute.xlu1 %558 }
0x14f5   :  { %562 = vst.msk [vmem:[#allocation2] sm:$0xc0] %vm561_vm8, %v559_v49 }
0x14f8   :  { %v878_v50 = vpop.permute.xlu1 %877 }
0x14f9   :  { %880 = vst.msk [vmem:[#allocation2 + $0x8] sm:$0x30] %vm452_vm9, %v878_v50 }
0x14fc   :  { %v2356_v33 = vpop.eup %2355 }
0x14fd   :  { %980 = vrot.lane.b32.xlu0 %v2356_v33, %s2417_s1 }
0x1501   :  { %449 = vrot.lane.b32.xlu0 %v2576_v11, %s2418_s14  ;;  %v989_v11 = vld [vmem:[#allocation4] sm:$0xff] }
0x1502   :  { %2223 = vmatprep.subr.mxu1 %v989_v11 }
0x1503   :  { %2224 = vmatpush3.msra.mxu1 %v989_v11 }
0x1504   :  { %2239 = vmatprep.subr.mxu1 %v2414_v0 }
0x1505   :  { %769 = vrot.lane.b32.xlu0 %v2639_v4, %s2418_s14 }
0x156f   :  { %v981_v57 = vpop.permute.xlu0 %980 }
0x1570   :  { %v983_v58 = vmul.f32 %v981_v57, %v963_v42 }
0x1572   :  { %985 = vrot.lane.b32.xlu0 %v983_v58, %s2418_s14 }
0x1573   :  { %v450_v5 = vpop.permute.xlu0 %449 }
0x1574   :  { %453 = vst.msk [vmem:[#allocation2] sm:$0x30] %vm452_vm9, %v450_v5 }
0x1577   :  { %v770_v59 = vpop.permute.xlu0 %769 }
0x1578   :  { %772 = vst.msk [vmem:[#allocation2 + $0x8] sm:$0xc] %vm343_vm7, %v770_v59 }
0x157b   :  { %v998_v6 = vld [vmem:[#allocation2] sm:$0xff] }
0x157c   :  { %2225 = vmatprep.mubr.msk.f32.mxu1 %vm137_vm6, %v998_v6 }
0x15e4   :  { %v986_v60 = vpop.permute.xlu0 %985 }
0x15e5   :  { %988 = vst.msk [vmem:[#allocation2 + $0x8] sm:$0xc0] %vm561_vm8, %v986_v60 }
0x15ec   :  { %v999_v7 = vld [vmem:[#allocation2 + $0x8] sm:$0xff] }
0x15ed   :  { %2226 = vmatmul.mubr.msk.f32.vlgmr.msra.gmra.mxu1 %vm137_vm6, %v999_v7 }
0x15ee   :  { %2240 = vmatpush3.msra.mxu1 %v2674_v53  ;;  %2247 = vmatprep.mubr.msk.f32.mxu1 %vm2415_vm0, %v2414_v0 }
0x15ef   :  { %2241 = vmatprep.subr.mxu1 %v2414_v0 }
0x15f0   :  { %2242 = vmatpush3.msra.mxu1 %v2677_v55 }
0x15f1   :  { %2243 = vmatprep.subr.mxu1 %v2414_v0 }
0x15f2   :  { %2244 = vmatpush3.msra.mxu1 %v2680_v2 }
0x15f3   :  { %2245 = vmatprep.subr.mxu1 %v2414_v0 }
0x15f4   :  { %2246 = vmatpush3.msra.mxu1 %v2686_v56 }
0x15f5   :  { %2261 = vmatprep.subr.mxu1 %v2414_v0 }
0x16ad   :  { %v2227_v1 = vpop.f32.mrf.mxu1 }
0x16ae   :  { %v2718_v3 = vadd.f32 %v2227_v1, %v2025_v63 }
0x16af   :  { %v1076_v4 = vpop.f32.mrf.mxu1 }
0x16b0   :  { %v2720_v9 = vadd.f32 %v2025_v63, %v1076_v4 }
0x16b2   :  { %v1155_v10 = vadd.f32 %v1151_v61, %v2720_v9 }
0x16b4   :  { %v1156_v13 = vmul.f32 %v1155_v10, %v2523_v16 }
0x16b6   :  { %2357 = vtanh.f32 %v1156_v13 }
0x16c3   :  { %v2358_v15 = vpop.eup %2357 }
0x16c4   :  { %v1158_v17 = vmul.f32 %v2358_v15, %v2523_v16 }
0x16c6   :  { %v1159_v18 = vadd.f32 %v1158_v17, %v2527_v22 }
0x16c8   :  { %1162 = vrot.lane.b32.xlu1 %v1159_v18, %s2417_s1  ;;  %v1160_v21 = vmul.f32 0.0, %v1159_v18 }
0x173a   :  { %v1163_v19 = vpop.permute.xlu1 %1162 }
0x173b   :  { %v1165_v20 = vmul.f32 %v1163_v19, %v1159_v18 }
0x173d   :  { %1167 = vrot.lane.b32.xlu0 %v1165_v20, %s2418_s14 }
0x17af   :  { %v1168_v23 = vpop.permute.xlu0 %1167 }
0x17b0   :  { %v1170_v24 = vadd.f32 %v1168_v23, %v1160_v21 }
0x17b2   :  { %2359 = vtanh.f32 %v1170_v24  ;;  %v1271_v39 = vrot.slane %v1170_v24, 6 }
0x17bf   :  { %v2360_v25 = vpop.eup %2359 }
0x17c0   :  { %1173 = vrot.lane.b32.xlu1 %v2360_v25, %s2417_s1 }
0x1832   :  { %v1174_v26 = vpop.permute.xlu1 %1173 }
0x1833   :  { %v2729_v27 = vmul.f32 %v1174_v26, %v1159_v18 }
0x1835   :  { %1188 = vrot.lane.b32.xlu0 %v2729_v27, %s2418_s14 }
0x18a7   :  { %v1189_v28 = vpop.permute.xlu0 %1188 }
0x18a8   :  { %2248 = vmatmul.mubr.msk.f32.vlgmr.msra.gmra.mxu1 %vm137_vm6, %v1189_v28 }
0x18a9   :  { %2262 = vmatpush3.msra.mxu1 %v2674_v53  ;;  %2269 = vmatprep.mubr.msk.f32.mxu1 %vm2415_vm0, %v2414_v0 }
0x18aa   :  { %2263 = vmatprep.subr.mxu1 %v2414_v0 }
0x18ab   :  { %2264 = vmatpush3.msra.mxu1 %v2677_v55 }
0x18ac   :  { %2265 = vmatprep.subr.mxu1 %v2414_v0 }
0x18ad   :  { %2266 = vmatpush3.msra.mxu1 %v2680_v2 }
0x18ae   :  { %2267 = vmatprep.subr.mxu1 %v2414_v0 }
0x18af   :  { %2268 = vmatpush3.msra.mxu1 %v2686_v56 }
0x18b0   :  { %2283 = vmatprep.subr.mxu1 %v2414_v0 }
0x1968   :  { %v1258_v29 = vpop.f32.mrf.mxu1 }
0x1969   :  { %v1263_v30 = vrot.slane %v1258_v29, 6 }
0x196a   :  { %v2249_v31 = vpop.f32.mrf.mxu1 }
0x196b   :  { %v1265_v14 = vadd.f32 %v1263_v30, %v2720_v9 }
0x196d   :  { %v1266_v32 = vmul.f32 %v1265_v14, %v2523_v16 }
0x196f   :  { %2361 = vtanh.f32 %v1266_v32 }
0x197c   :  { %v2362_v34 = vpop.eup %2361 }
0x197d   :  { %v1268_v35 = vmul.f32 %v2362_v34, %v2523_v16 }
0x197f   :  { %v1269_v36 = vadd.f32 %v1268_v35, %v2527_v22 }
0x1981   :  { %1275 = vrot.lane.b32.xlu1 %v1269_v36, %s2417_s1  ;;  %v1273_v40 = vmul.f32 %v1271_v39, %v1269_v36 }
0x19f3   :  { %v1276_v37 = vpop.permute.xlu1 %1275 }
0x19f4   :  { %v1278_v38 = vmul.f32 %v1276_v37, %v1269_v36 }
0x19f6   :  { %1280 = vrot.lane.b32.xlu0 %v1278_v38, %s2418_s14 }
0x1a68   :  { %v1281_v41 = vpop.permute.xlu0 %1280 }
0x1a69   :  { %v1283_v42 = vadd.f32 %v1281_v41, %v1273_v40 }
0x1a6b   :  { %2363 = vtanh.f32 %v1283_v42  ;;  %v1388_v58 = vrot.slane %v1283_v42, 6 }
0x1a78   :  { %v2364_v43 = vpop.eup %2363 }
0x1a79   :  { %1286 = vrot.lane.b32.xlu1 %v2364_v43, %s2417_s1 }
0x1aeb   :  { %v1287_v44 = vpop.permute.xlu1 %1286 }
0x1aec   :  { %v2751_v12 = vmul.f32 %v1287_v44, %v1269_v36 }
0x1aee   :  { %v1304_v45 = vrot.slane %v2751_v12, 2 }
0x1af0   :  { %1305 = vrot.lane.b32.xlu0 %v1304_v45, %s2418_s14 }
0x1b62   :  { %v1306_v46 = vpop.permute.xlu0 %1305 }
0x1b63   :  { %2259 = vmatmul.mubr.msk.f32.vlgmr.msra.gmra.mxu0 %vm137_vm6, %v1306_v46 }
0x1b64   :  { %2273 = vmatpush3.msra.mxu0 %v2674_v53  ;;  %2280 = vmatprep.mubr.msk.f32.mxu0 %vm2415_vm0, %v2414_v0 }
0x1b65   :  { %2274 = vmatprep.subr.mxu0 %v2414_v0 }
0x1b66   :  { %2275 = vmatpush3.msra.mxu0 %v2677_v55 }
0x1b67   :  { %2276 = vmatprep.subr.mxu0 %v2414_v0 }
0x1b68   :  { %2277 = vmatpush3.msra.mxu0 %v2680_v2 }
0x1b69   :  { %2278 = vmatprep.subr.mxu0 %v2414_v0 }
0x1b6a   :  { %2279 = vmatpush3.msra.mxu0 %v2686_v56 }
0x1b6b   :  { %2294 = vmatprep.subr.mxu0 %v2414_v0 }
0x1c23   :  { %v1375_v47 = vpop.f32.mrf.mxu0 }
0x1c24   :  { %v1380_v48 = vrot.slane %v1375_v47, 4 }
0x1c25   :  { %v2260_v49 = vpop.f32.mrf.mxu0 }
0x1c26   :  { %v1382_v50 = vadd.f32 %v1380_v48, %v2720_v9 }
0x1c28   :  { %v1383_v33 = vmul.f32 %v1382_v50, %v2523_v16 }
0x1c2a   :  { %2365 = vtanh.f32 %v1383_v33 }
0x1c37   :  { %v2366_v51 = vpop.eup %2365 }
0x1c38   :  { %v1385_v52 = vmul.f32 %v2366_v51, %v2523_v16 }
0x1c3a   :  { %v1386_v54 = vadd.f32 %v1385_v52, %v2527_v22 }
0x1c3c   :  { %1392 = vrot.lane.b32.xlu1 %v1386_v54, %s2417_s1  ;;  %v1390_v5 = vmul.f32 %v1388_v58, %v1386_v54 }
0x1cae   :  { %v1393_v11 = vpop.permute.xlu1 %1392 }
0x1caf   :  { %v1395_v57 = vmul.f32 %v1393_v11, %v1386_v54 }
0x1cb1   :  { %1397 = vrot.lane.b32.xlu0 %v1395_v57, %s2418_s14 }
0x1d23   :  { %v1398_v59 = vpop.permute.xlu0 %1397 }
0x1d24   :  { %v1400_v6 = vadd.f32 %v1398_v59, %v1390_v5 }
0x1d26   :  { %2367 = vtanh.f32 %v1400_v6  ;;  %v1505_v23 = vrot.slane %v1400_v6, 6 }
0x1d33   :  { %v2368_v60 = vpop.eup %2367 }
0x1d34   :  { %1403 = vrot.lane.b32.xlu1 %v2368_v60, %s2417_s1 }
0x1da6   :  { %v1404_v7 = vpop.permute.xlu1 %1403 }
0x1da7   :  { %v2773_v61 = vmul.f32 %v1404_v7, %v1386_v54 }
0x1da9   :  { %v1421_v62 = vrot.slane %v2773_v61, 4 }
0x1dab   :  { %1422 = vrot.lane.b32.xlu0 %v1421_v62, %s2418_s14 }
0x1e1d   :  { %v1423_v63 = vpop.permute.xlu0 %1422 }
0x1e1e   :  { %2270 = vmatmul.mubr.msk.f32.vlgmr.msra.gmra.mxu1 %vm137_vm6, %v1423_v63 }
0x1e1f   :  { %2284 = vmatpush3.msra.mxu1 %v2674_v53  ;;  %2291 = vmatprep.mubr.msk.f32.mxu1 %vm2415_vm0, %v2414_v0 }
0x1e20   :  { %2285 = vmatprep.subr.mxu1 %v2414_v0 }
0x1e21   :  { %2286 = vmatpush3.msra.mxu1 %v2677_v55 }
0x1e22   :  { %2287 = vmatprep.subr.mxu1 %v2414_v0 }
0x1e23   :  { %2288 = vmatpush3.msra.mxu1 %v2680_v2 }
0x1e24   :  { %2289 = vmatprep.subr.mxu1 %v2414_v0 }
0x1e25   :  { %2290 = vmatpush3.msra.mxu1 %v2686_v56 }
0x1e26   :  { %2305 = vmatprep.subr.mxu1 %v2414_v0 }
0x1ede   :  { %v1492_v1 = vpop.f32.mrf.mxu1 }
0x1edf   :  { %v1497_v4 = vrot.slane %v1492_v1, 2 }
0x1ee0   :  { %v2271_v10 = vpop.f32.mrf.mxu1 }
0x1ee1   :  { %v1499_v13 = vadd.f32 %v1497_v4, %v2720_v9 }
0x1ee3   :  { %v1500_v15 = vmul.f32 %v1499_v13, %v2523_v16 }
0x1ee5   :  { %2369 = vtanh.f32 %v1500_v15 }
0x1ef2   :  { %v2370_v17 = vpop.eup %2369 }
0x1ef3   :  { %v1502_v18 = vmul.f32 %v2370_v17, %v2523_v16 }
0x1ef5   :  { %v1503_v19 = vadd.f32 %v1502_v18, %v2527_v22 }
0x1ef7   :  { %1509 = vrot.lane.b32.xlu1 %v1503_v19, %s2417_s1  ;;  %v1507_v24 = vmul.f32 %v1505_v23, %v1503_v19 }
0x1f69   :  { %v1510_v20 = vpop.permute.xlu1 %1509 }
0x1f6a   :  { %v1512_v21 = vmul.f32 %v1510_v20, %v1503_v19 }
0x1f6c   :  { %1514 = vrot.lane.b32.xlu0 %v1512_v21, %s2418_s14 }
0x1fde   :  { %v1515_v25 = vpop.permute.xlu0 %1514 }
0x1fdf   :  { %v1517_v26 = vadd.f32 %v1515_v25, %v1507_v24 }
0x1fe1   :  { %2371 = vtanh.f32 %v1517_v26  ;;  %v1619_v41 = vrot.slane %v1517_v26, 6 }
0x1fee   :  { %v2372_v9 = vpop.eup %2371 }
0x1fef   :  { %1520 = vrot.lane.b32.xlu1 %v2372_v9, %s2417_s1 }
0x2061   :  { %v1521_v28 = vpop.permute.xlu1 %1520 }
0x2062   :  { %v2795_v29 = vmul.f32 %v1521_v28, %v1503_v19 }
0x2064   :  { %v1538_v30 = vrot.slane %v2795_v29, 6 }
0x2066   :  { %1539 = vrot.lane.b32.xlu0 %v1538_v30, %s2418_s14 }
0x20d8   :  { %v1540_v31 = vpop.permute.xlu0 %1539 }
0x20d9   :  { %2281 = vmatmul.mubr.msk.f32.vlgmr.msra.gmra.mxu0 %vm137_vm6, %v1540_v31 }
0x20da   :  { %2295 = vmatpush3.msra.mxu0 %v2674_v53  ;;  %2302 = vmatprep.mubr.msk.f32.mxu0 %vm2415_vm0, %v2414_v0 }
0x20db   :  { %2296 = vmatprep.subr.mxu0 %v2414_v0 }
0x20dc   :  { %2297 = vmatpush3.msra.mxu0 %v2677_v55 }
0x20dd   :  { %2298 = vmatprep.subr.mxu0 %v2414_v0 }
0x20de   :  { %2299 = vmatpush3.msra.mxu0 %v2680_v2 }
0x20df   :  { %2300 = vmatprep.subr.mxu0 %v2414_v0 }
0x20e0   :  { %2301 = vmatpush3.msra.mxu0 %v2686_v56 }
0x2199   :  { %v1609_v14 = vpop.f32.mrf.mxu0 }
0x219a   :  { %v1613_v32 = vadd.f32 %v1609_v14, %v2718_v3 }
0x219b   :  { %v2282_v34 = vpop.f32.mrf.mxu0 }
0x219c   :  { %v1614_v35 = vmul.f32 %v1613_v32, %v2523_v16 }
0x219e   :  { %2373 = vtanh.f32 %v1614_v35 }
0x21ab   :  { %v2374_v36 = vpop.eup %2373 }
0x21ac   :  { %v1616_v37 = vmul.f32 %v2374_v36, %v2523_v16  ;;  %v1178_v36 = vshrl.u32 %v35_v8, 7 }
0x21ae   :  { %v1617_v38 = vadd.f32 %v1616_v37, %v2527_v22 }
0x21b0   :  { %1623 = vrot.lane.b32.xlu1 %v1617_v38, %s2417_s1  ;;  %v1621_v42 = vmul.f32 %v1619_v41, %v1617_v38 }
0x2222   :  { %v1624_v39 = vpop.permute.xlu1 %1623 }
0x2223   :  { %v1626_v40 = vmul.f32 %v1624_v39, %v1617_v38  ;;  %v1292_v39 = vsub.s32 1, %v1178_v36 }
0x2225   :  { %1628 = vrot.lane.b32.xlu0 %v1626_v40, %s2418_s14  ;;  %v42_v40 = vld [vmem:[%s2883_s3] sm:$0xff] }
0x2297   :  { %v1629_v43 = vpop.permute.xlu0 %1628 }
0x2298   :  { %v1631_v44 = vadd.f32 %v1629_v43, %v1621_v42  ;;  %v1293_v42 = vrot.slane %v42_v40, %v1292_v39  ;;  %v1409_v43 = vsub.s32 2, %v1178_v36 }
0x229a   :  { %2375 = vtanh.f32 %v1631_v44 }
0x22a7   :  { %v2376_v45 = vpop.eup %2375 }
0x22a8   :  { %1634 = vrot.lane.b32.xlu1 %v2376_v45, %s2417_s1  ;;  %v1870_v45 = vsub.s32 6, %v1178_v36 }
0x231a   :  { %v1635_v46 = vpop.permute.xlu1 %1634 }
0x231b   :  { %v2816_v47 = vmul.f32 %v1635_v46, %v1617_v38  ;;  %v1179_v46 = vsub.s32 0, %v1178_v36 }
0x231d   :  { %1649 = vrot.lane.b32.xlu0 %v2816_v47, %s2418_s14 }
0x238f   :  { %v1650_v48 = vpop.permute.xlu0 %1649 }
0x2390   :  { %2292 = vmatmul.mubr.msk.f32.vlgmr.msra.gmra.mxu1 %vm137_vm6, %v1650_v48 }
0x2391   :  { %2306 = vmatpush3.msra.mxu1 %v2674_v53  ;;  %2313 = vmatprep.mubr.msk.f32.mxu1 %vm2415_vm0, %v2414_v0 }
0x2392   :  { %2307 = vmatprep.subr.mxu1 %v2414_v0 }
0x2393   :  { %2308 = vmatpush3.msra.mxu1 %v2677_v55 }
0x2394   :  { %2309 = vmatprep.subr.mxu1 %v2414_v0 }
0x2395   :  { %2310 = vmatpush3.msra.mxu1 %v2680_v2 }
0x2396   :  { %2311 = vmatprep.subr.mxu1 %v2414_v0  ;;  %v1732_v0 = vrot.slane %v1631_v44, 6  ;;  %v1640_v44 = vsub.s32 4, %v1178_v36 }
0x2397   :  { %2312 = vmatpush3.msra.mxu1 %v2686_v56 }
0x2398   :  { %v1641_v8 = vrot.slane %v42_v40, %v1640_v44 }
0x2450   :  { %v1719_v49 = vpop.f32.mrf.mxu1 }
0x2451   :  { %v1724_v50 = vrot.slane %v1719_v49, 6 }
0x2452   :  { %v2293_v33 = vpop.f32.mrf.mxu1 }
0x2453   :  { %v1726_v53 = vadd.f32 %v1724_v50, %v2718_v3  ;;  %v1526_v50 = vsub.s32 3, %v1178_v36  ;;  %v1987_v33 = vsub.s32 7, %v1178_v36 }
0x2455   :  { %v1727_v51 = vmul.f32 %v1726_v53, %v2523_v16  ;;  %v1988_v53 = vrot.slane %v42_v40, %v1987_v33 }
0x2457   :  { %2377 = vtanh.f32 %v1727_v51  ;;  %v1527_v51 = vrot.slane %v42_v40, %v1526_v50 }
0x2464   :  { %v2378_v52 = vpop.eup %2377 }
0x2465   :  { %v1729_v54 = vmul.f32 %v2378_v52, %v2523_v16  ;;  %v1753_v52 = vsub.s32 5, %v1178_v36 }
0x2467   :  { %v1730_v55 = vadd.f32 %v1729_v54, %v2527_v22  ;;  %v1754_v54 = vrot.slane %v42_v40, %v1753_v52 }
0x2469   :  { %1736 = vrot.lane.b32.xlu1 %v1730_v55, %s2417_s1  ;;  %v1734_v56 = vmul.f32 %v1732_v0, %v1730_v55 }
0x24db   :  { %v1737_v2 = vpop.permute.xlu1 %1736 }
0x24dc   :  { %v1739_v11 = vmul.f32 %v1737_v2, %v1730_v55 }
0x24de   :  { %1741 = vrot.lane.b32.xlu0 %v1739_v11, %s2418_s14 }
0x2550   :  { %v1742_v57 = vpop.permute.xlu0 %1741 }
0x2551   :  { %v1744_v58 = vadd.f32 %v1742_v57, %v1734_v56 }
0x2553   :  { %2379 = vtanh.f32 %v1744_v58  ;;  %v1849_v20 = vrot.slane %v1744_v58, 6 }
0x2560   :  { %v2380_v5 = vpop.eup %2379 }
0x2561   :  { %1747 = vrot.lane.b32.xlu1 %v2380_v5, %s2417_s1 }
0x25d3   :  { %v1748_v59 = vpop.permute.xlu1 %1747 }
0x25d4   :  { %v2837_v6 = vmul.f32 %v1748_v59, %v1730_v55 }
0x25d6   :  { %v1765_v60 = vrot.slane %v2837_v6, 2 }
0x25d8   :  { %1766 = vrot.lane.b32.xlu0 %v1765_v60, %s2418_s14 }
0x264a   :  { %v1767_v7 = vpop.permute.xlu0 %1766 }
0x264b   :  { %2303 = vmatmul.mubr.msk.f32.vlgmr.msra.gmra.mxu0 %vm137_vm6, %v1767_v7 }
0x270b   :  { %v1836_v62 = vpop.f32.mrf.mxu0 }
0x270c   :  { %v1841_v63 = vrot.slane %v1836_v62, 4 }
0x270d   :  { %v2304_v1 = vpop.f32.mrf.mxu0 }
0x270e   :  { %v1843_v4 = vadd.f32 %v1841_v63, %v2718_v3 }
0x2710   :  { %v1844_v10 = vmul.f32 %v1843_v4, %v2523_v16 }
0x2712   :  { %2381 = vtanh.f32 %v1844_v10 }
0x271f   :  { %v2382_v13 = vpop.eup %2381 }
0x2720   :  { %v1846_v15 = vmul.f32 %v2382_v13, %v2523_v16 }
0x2722   :  { %v1847_v17 = vadd.f32 %v1846_v15, %v2527_v22 }
0x2724   :  { %1853 = vrot.lane.b32.xlu1 %v1847_v17, %s2417_s1  ;;  %v1851_v21 = vmul.f32 %v1849_v20, %v1847_v17 }
0x2796   :  { %v1854_v18 = vpop.permute.xlu1 %1853 }
0x2797   :  { %v1856_v19 = vmul.f32 %v1854_v18, %v1847_v17 }
0x2799   :  { %1858 = vrot.lane.b32.xlu0 %v1856_v19, %s2418_s14 }
0x280b   :  { %v1859_v23 = vpop.permute.xlu0 %1858 }
0x280c   :  { %v1861_v24 = vadd.f32 %v1859_v23, %v1851_v21 }
0x280e   :  { %2383 = vtanh.f32 %v1861_v24  ;;  %v1966_v55 = vrot.slane %v1861_v24, 6 }
0x281b   :  { %v2384_v25 = vpop.eup %2383 }
0x281c   :  { %1864 = vrot.lane.b32.xlu1 %v2384_v25, %s2417_s1 }
0x288e   :  { %v1865_v26 = vpop.permute.xlu1 %1864 }
0x288f   :  { %v2849_v9 = vmul.f32 %v1865_v26, %v1847_v17 }
0x2891   :  { %v1882_v28 = vrot.slane %v2849_v9, 4 }
0x2893   :  { %1883 = vrot.lane.b32.xlu0 %v1882_v28, %s2418_s14 }
0x2905   :  { %v1884_v30 = vpop.permute.xlu0 %1883 }
0x2906   :  { %2314 = vmatmul.mubr.msk.f32.vlgmr.msra.gmra.mxu1 %vm137_vm6, %v1884_v30 }
0x29c6   :  { %v1953_v31 = vpop.f32.mrf.mxu1 }
0x29c7   :  { %v1958_v14 = vrot.slane %v1953_v31, 2 }
0x29c8   :  { %v2315_v32 = vpop.f32.mrf.mxu1 }
0x29c9   :  { %v1960_v34 = vadd.f32 %v1958_v14, %v2718_v3  ;;  %v1410_v3 = vrot.slane %v42_v40, %v1409_v43 }
0x29cb   :  { %v1961_v35 = vmul.f32 %v1960_v34, %v2523_v16 }
0x29cd   :  { %2385 = vtanh.f32 %v1961_v35 }
0x29da   :  { %v2386_v37 = vpop.eup %2385 }
0x29db   :  { %v1963_v38 = vmul.f32 %v2386_v37, %v2523_v16  ;;  %v1871_v16 = vrot.slane %v42_v40, %v1870_v45 }
0x29dd   :  { %v1964_v41 = vadd.f32 %v1963_v38, %v2527_v22  ;;  %v1180_v22 = vrot.slane %v42_v40, %v1179_v46 }
0x29df   :  { %1970 = vrot.lane.b32.xlu1 %v1964_v41, %s2417_s1  ;;  %v1968_v2 = vmul.f32 %v1966_v55, %v1964_v41 }
0x29e3   :  { %1295 = vrot.lane.b32.xlu1 %v1293_v42, %s2419_s17 }
0x29e7   :  { %1412 = vrot.lane.b32.xlu1 %v1410_v3, %s2419_s17 }
0x29eb   :  { %1643 = vrot.lane.b32.xlu1 %v1641_v8, %s2419_s17 }
0x29ef   :  { %1873 = vrot.lane.b32.xlu1 %v1871_v16, %s2419_s17 }
0x29f3   :  { %1990 = vrot.lane.b32.xlu1 %v1988_v53, %s2419_s17 }
0x2a51   :  { %v1971_v48 = vpop.permute.xlu1 %1970 }
0x2a52   :  { %v1973_v49 = vmul.f32 %v1971_v48, %v1964_v41 }
0x2a54   :  { %1975 = vrot.lane.b32.xlu0 %v1973_v49, %s2418_s14 }
0x2a55   :  { %v1296_v57 = vpop.permute.xlu1 %1295 }
0x2a56   :  { %v1298_v5 = vmul.f32 %v1296_v57, %v2751_v12 }
0x2a58   :  { %1182 = vrot.lane.b32.xlu0 %v1180_v22, %s2419_s17  ;;  %v1300_v62 = vrot.slane %v1298_v5, 2 }
0x2a59   :  { %v1413_v59 = vpop.permute.xlu1 %1412 }
0x2a5a   :  { %v1415_v63 = vmul.f32 %v1413_v59, %v2773_v61 }
0x2a5c   :  { %1529 = vrot.lane.b32.xlu0 %v1527_v51, %s2419_s17  ;;  %v1417_v10 = vrot.slane %v1415_v63, 4 }
0x2a5d   :  { %v1644_v15 = vpop.permute.xlu1 %1643 }
0x2a5e   :  { %v1646_v12 = vmul.f32 %v1644_v15, %v2816_v47  ;;  %v2006_v47 = vstv %s2884_s4 }
0x2a60   :  { %1756 = vrot.lane.b32.xlu0 %v1754_v54, %s2419_s17 }
0x2a61   :  { %v1874_v21 = vpop.permute.xlu1 %1873 }
0x2a65   :  { %v1991_v61 = vpop.permute.xlu1 %1990 }
0x2ac6   :  { %v1976_v11 = vpop.permute.xlu0 %1975 }
0x2ac7   :  { %v1978_v0 = vadd.f32 %v1976_v11, %v1968_v2 }
0x2ac9   :  { %2387 = vtanh.f32 %v1978_v0 }
0x2aca   :  { %v1183_v58 = vpop.permute.xlu0 %1182 }
0x2acb   :  { %v1185_v7 = vmul.f32 %v1183_v58, %v2729_v27  ;;  %v1876_v27 = vmul.f32 %v1874_v21, %v2849_v9 }
0x2acd   :  { %v1302_v4 = vadd.f32 %v1300_v62, %v1185_v7  ;;  %v1878_v28 = vrot.slane %v1876_v27, 4 }
0x2ace   :  { %v1530_v60 = vpop.permute.xlu0 %1529 }
0x2acf   :  { %v1532_v1 = vmul.f32 %v1530_v60, %v2795_v29  ;;  %v1419_v18 = vadd.f32 %v1417_v10, %v1302_v4 }
0x2ad1   :  { %v1534_v13 = vrot.slane %v1532_v1, 6 }
0x2ad2   :  { %v1757_v17 = vpop.permute.xlu0 %1756 }
0x2ad3   :  { %v1536_v19 = vadd.f32 %v1534_v13, %v1419_v18  ;;  %v1759_v20 = vmul.f32 %v1757_v17, %v2837_v6 }
0x2ad5   :  { %v1647_v23 = vadd.f32 %v1646_v12, %v1536_v19  ;;  %v1761_v24 = vrot.slane %v1759_v20, 2 }
0x2ad6   :  { %v2388_v56 = vpop.eup %2387 }
0x2ad7   :  { %1981 = vrot.lane.b32.xlu0 %v2388_v56, %s2417_s1  ;;  %v1763_v26 = vadd.f32 %v1761_v24, %v1647_v23 }
0x2ad9   :  { %v1880_v31 = vadd.f32 %v1878_v28, %v1763_v26 }
0x2b49   :  { %v1982_v25 = vpop.permute.xlu0 %1981 }
0x2b4a   :  { %v1984_v29 = vmul.f32 %v1982_v25, %v1964_v41 }
0x2b4c   :  { %v1993_v30 = vmul.f32 %v1991_v61, %v1984_v29 }
0x2b4e   :  { %v1995_v14 = vrot.slane %v1993_v30, 6 }
0x2b50   :  { %v1997_v32 = vadd.f32 %v1995_v14, %v1880_v31 }
0x2b52   :  { %1999 = vrot.lane.b32.xlu0 %v1997_v32, %s2418_s14 }
0x2bc4   :  { %v2000_v34 = vpop.permute.xlu0 %1999 }
0x2bc5   :  { %v2002_v6 = vsel %vm237_vm5, %v2000_v34, 0.0 }
0x2bc6   :  { %2003 = vadd.xlane.f32.xlu1 %v2002_v6 }
0x2c4f   :  { %v2004_v9 = vpop.xlane.xlu1 %2003 }
0x2c50   :  { %v2007_v35 = vadd.f32 %v2006_v47, %v2004_v9 }
0x2c52   :  { %2009 = vst.msk [vmem:[%s2885_s5] sm:$0x3] %vm2008_vm10, %v2007_v35 }
0x2c53   :  { %2014 = vsyncpa [#allocation5], 1 }

</bundles_post_ra>
